<compile_context>
chip_gen: v7x
topology: tpu7x:2x2x1
jax: 0.10.0
libtpu: 0.0.40
codegen_flags: <defaults>
</compile_context>

<pallas_src>
import jax
import jax.numpy as jnp
import numpy as np
from jax import lax
from jax.experimental import pallas as pl
from jax.experimental.pallas import tpu as pltpu

C_MID = 32     # channels after 3x3 conv
C_OUT = 1280   # channels after 1x1 conv
EPS = 1e-5     # BatchNorm2d default eps


def _edge_kernel(patches_ref, w1_ref, scale_ref, shift_ref, w2_ref, b2_ref, out_ref):
    # --- 3x3 conv + folded BN + ReLU for each of the 4 positions of the 2x2 pool
    #     window, fused with MaxPool2d(2) via a running elementwise max (VPU only).
    pooled = None
    for q in range(4):                                             # static unroll (4)
        y = jnp.dot(w1_ref[...], patches_ref[q],                   # (32, 9) @ (9, TM)
                    preferred_element_type=jnp.float32)            # -> (32, TM) f32
        y = jnp.maximum(y * scale_ref[...] + shift_ref[...], 0.0)  # per-channel affine + ReLU
        pooled = y if pooled is None else jnp.maximum(pooled, y)

    # --- 1x1 conv: bf16 MXU matmul with f32 accumulation, lane-dense output block.
    out_ref[...] = jnp.dot(w2_ref[...], pooled.astype(jnp.bfloat16),   # (1280,32)@(32,TM)
                           preferred_element_type=jnp.float32) + b2_ref[...]


def light_edge_extractor(x_nchw, params):
    """x_nchw: (N, 1, H, W) float32 -> (N, 1280, H//2, W//2) float32 (PyTorch NCHW)."""
    w1, b1, gamma, beta, mean, var, w2, b2 = params
    N, cin, H, W = x_nchw.shape
    assert cin == 1 and H % 2 == 0 and W % 2 == 0
    Hp, Wp = H // 2, W // 2
    Mp = N * Hp * Wp                                   # pooled pixels, flattened batch+space

    # row-tile size over pooled pixels: multiple of 128 (lane-dense), capped at 512
    Mp_128 = ((Mp + 127) // 128) * 128
    TM = min(512, Mp_128)
    Mp_pad = ((Mp + TM - 1) // TM) * TM

    # ---- glue (plain JAX): tap-major im2col, grouped by 2x2-pool-window position
    x = x_nchw[:, 0, :, :].astype(jnp.float32)
    xp = jnp.pad(x, ((0, 0), (1, 1), (1, 1)))                                # (N, H+2, W+2)
    taps = jnp.stack([xp[:, dy:dy + H, dx:dx + W]
                      for dy in range(3) for dx in range(3)], axis=0)        # (9, N, H, W)
    taps = taps.reshape(9, N, Hp, 2, Wp, 2)                                  # (t, n, hp, qh, wp, qw)
    patches = taps.transpose(3, 5, 0, 1, 2, 4).reshape(4, 9, Mp)             # (q, t, m)
    if Mp_pad != Mp:
        patches = jnp.pad(patches, ((0, 0), (0, 0), (0, Mp_pad - Mp)))

    # ---- glue: parameter re-layout + BN/bias folding (channels on sublanes)
    w1_mat = w1.reshape(C_MID, 9).astype(jnp.float32)                        # (32, 9) tap-major
    inv_std = gamma / jnp.sqrt(var + EPS)
    scale = inv_std.reshape(C_MID, 1).astype(jnp.float32)                    # (32, 1)
    shift = (beta + (b1 - mean) * inv_std).reshape(C_MID, 1).astype(jnp.float32)
    w2_mat = w2.reshape(C_OUT, C_MID).astype(jnp.bfloat16)                   # (1280, 32)
    b2_col = b2.reshape(C_OUT, 1).astype(jnp.float32)                        # (1280, 1)

    out = pl.pallas_call(
        _edge_kernel,
        out_shape=jax.ShapeDtypeStruct((C_OUT, Mp_pad), jnp.float32),
        grid_spec=pltpu.PrefetchScalarGridSpec(
            num_scalar_prefetch=0,
            grid=(Mp_pad // TM,),
            in_specs=[
                pl.BlockSpec((4, 9, TM), lambda i: (0, 0, i)),        # im2col patches (row tile)
                pl.BlockSpec((C_MID, 9), lambda i: (0, 0)),           # conv3x3 weights
                pl.BlockSpec((C_MID, 1), lambda i: (0, 0)),           # folded BN scale
                pl.BlockSpec((C_MID, 1), lambda i: (0, 0)),           # folded BN shift (+conv bias)
                pl.BlockSpec((C_OUT, C_MID), lambda i: (0, 0)),       # 1x1 conv weights (bf16)
                pl.BlockSpec((C_OUT, 1), lambda i: (0, 0)),           # 1x1 conv bias
            ],
            out_specs=pl.BlockSpec((C_OUT, TM), lambda i: (0, i)),    # lane-dense output tile
        ),
        compiler_params=pltpu.CompilerParams(dimension_semantics=("parallel",)),
    )(patches, w1_mat, scale, shift, w2_mat, b2_col)

    # rows ordered m = n*Hp*Wp + hp*Wp + wp -> back to NCHW
    out = out[:, :Mp].reshape(C_OUT, N, Hp, Wp).transpose(1, 0, 2, 3)
    return out


def reference(x_nchw, params):
    """Pure-JAX reference mirroring the PyTorch module (BN in eval mode)."""
    w1, b1, gamma, beta, mean, var, w2, b2 = params
    y = lax.conv_general_dilated(x_nchw, w1, (1, 1), ((1, 1), (1, 1)),
                                 dimension_numbers=("NCHW", "OIHW", "NCHW"))
    y = y + b1[None, :, None, None]
    y = (y - mean[None, :, None, None]) / jnp.sqrt(var[None, :, None, None] + EPS)
    y = y * gamma[None, :, None, None] + beta[None, :, None, None]
    y = jnp.maximum(y, 0.0)
    y = lax.reduce_window(y, -jnp.inf, lax.max, (1, 1, 2, 2), (1, 1, 2, 2), "VALID")
    y = lax.conv_general_dilated(y, w2, (1, 1), "VALID",
                                 dimension_numbers=("NCHW", "OIHW", "NCHW"))
    y = y + b2[None, :, None, None]
    return y


if __name__ == "__main__":
    key = jax.random.PRNGKey(0)
    ks = jax.random.split(key, 9)
    N, H, W = 2, 16, 16

    x = jax.random.normal(ks[0], (N, 1, H, W), jnp.float32)

    # deterministic synthetic parameters (shapes follow the PyTorch module's __init__)
    w1 = 0.3 * jax.random.normal(ks[1], (C_MID, 1, 3, 3), jnp.float32)      # Conv2d(1, 32, 3)
    b1 = 0.1 * jax.random.normal(ks[2], (C_MID,), jnp.float32)
    gamma = 1.0 + 0.1 * jax.random.normal(ks[3], (C_MID,), jnp.float32)     # BatchNorm2d(32)
    beta = 0.1 * jax.random.normal(ks[4], (C_MID,), jnp.float32)
    mean = 0.1 * jax.random.normal(ks[5], (C_MID,), jnp.float32)
    var = jax.random.uniform(ks[6], (C_MID,), jnp.float32, 0.5, 1.5)
    w2 = 0.1 * jax.random.normal(ks[7], (C_OUT, C_MID, 1, 1), jnp.float32)  # Conv2d(32, 1280, 1)
    b2 = 0.1 * jax.random.normal(ks[8], (C_OUT,), jnp.float32)
    params = (w1, b1, gamma, beta, mean, var, w2, b2)

    out = jax.block_until_ready(light_edge_extractor(x, params))
    ref = jax.block_until_ready(reference(x, params))

    assert out.shape == (N, C_OUT, H // 2, W // 2), out.shape
    np.testing.assert_allclose(np.asarray(out), np.asarray(ref), rtol=2e-2, atol=2e-2)
    print("KERNEL_OK")
</pallas_src>

<mosaic_0001>
module attributes {stable_mosaic.version = 11 : i64} {
  func.func @_edge_kernel(%arg0: i32, %arg1: memref<4x9x128xf32, #tpu.memory_space<vmem>>, %arg2: memref<32x9xf32, #tpu.memory_space<vmem>>, %arg3: memref<32x1xf32, #tpu.memory_space<vmem>>, %arg4: memref<32x1xf32, #tpu.memory_space<vmem>>, %arg5: memref<1280x32xbf16, #tpu.memory_space<vmem>>, %arg6: memref<1280x1xf32, #tpu.memory_space<vmem>>, %arg7: memref<1280x128xf32, #tpu.memory_space<vmem>>) attributes {dimension_semantics = [#tpu.dimension_semantics<parallel>], iteration_bounds = array<i64: 1>, scalar_prefetch = 0 : i64, scratch_operands = 0 : i64, tpu.core_type = #tpu.core_type<tc>, window_params = [{transform_indices = @transform_0, window_bounds = array<i64: 4, 9, 128>}, {pipeline_mode = #tpu.pipeline_mode<synchronous>, transform_indices = @transform_1, window_bounds = array<i64: 32, 9>}, {pipeline_mode = #tpu.pipeline_mode<synchronous>, transform_indices = @transform_2, window_bounds = array<i64: 32, 1>}, {pipeline_mode = #tpu.pipeline_mode<synchronous>, transform_indices = @transform_3, window_bounds = array<i64: 32, 1>}, {pipeline_mode = #tpu.pipeline_mode<synchronous>, transform_indices = @transform_4, window_bounds = array<i64: 1280, 32>}, {pipeline_mode = #tpu.pipeline_mode<synchronous>, transform_indices = @transform_5, window_bounds = array<i64: 1280, 1>}, {transform_indices = @transform_6, window_bounds = array<i64: 1280, 128>}]} {
    %c0 = arith.constant 0 : index
    %c0_0 = arith.constant 0 : index
    %0 = vector.load %arg2[%c0, %c0_0] : memref<32x9xf32, #tpu.memory_space<vmem>>, vector<32x9xf32>
    %c0_1 = arith.constant 0 : index
    %c0_2 = arith.constant 0 : index
    %c0_3 = arith.constant 0 : index
    %1 = vector.load %arg1[%c0_1, %c0_2, %c0_3] : memref<4x9x128xf32, #tpu.memory_space<vmem>>, vector<1x9x128xf32>
    %2 = vector.shape_cast %1 : vector<1x9x128xf32> to vector<9x128xf32>
    %cst = arith.constant dense<0.000000e+00> : vector<32x128xf32>
    %3 = tpu.matmul %0, %2, %cst {dimension_numbers = #tpu.dot_dimension_numbers<[1], [0], [0], [1], [0, 0, 1, 1], [], []>} : vector<32x9xf32>, vector<9x128xf32>, vector<32x128xf32> -> vector<32x128xf32>
    %c0_4 = arith.constant 0 : index
    %c0_5 = arith.constant 0 : index
    %4 = vector.load %arg3[%c0_4, %c0_5] : memref<32x1xf32, #tpu.memory_space<vmem>>, vector<32x1xf32>
    %5 = vector.broadcast %4 : vector<32x1xf32> to vector<32x128xf32>
    %6 = arith.mulf %3, %5 : vector<32x128xf32>
    %c0_6 = arith.constant 0 : index
    %c0_7 = arith.constant 0 : index
    %7 = vector.load %arg4[%c0_6, %c0_7] : memref<32x1xf32, #tpu.memory_space<vmem>>, vector<32x1xf32>
    %8 = vector.broadcast %7 : vector<32x1xf32> to vector<32x128xf32>
    %9 = arith.addf %6, %8 : vector<32x128xf32>
    %cst_8 = arith.constant 0.000000e+00 : f32
    %10 = vector.broadcast %cst_8 : f32 to vector<32x128xf32>
    %11 = arith.maximumf %9, %10 : vector<32x128xf32>
    %c0_9 = arith.constant 0 : index
    %c0_10 = arith.constant 0 : index
    %12 = vector.load %arg2[%c0_9, %c0_10] : memref<32x9xf32, #tpu.memory_space<vmem>>, vector<32x9xf32>
    %c1 = arith.constant 1 : index
    %c0_11 = arith.constant 0 : index
    %c0_12 = arith.constant 0 : index
    %13 = vector.load %arg1[%c1, %c0_11, %c0_12] : memref<4x9x128xf32, #tpu.memory_space<vmem>>, vector<1x9x128xf32>
    %14 = vector.shape_cast %13 : vector<1x9x128xf32> to vector<9x128xf32>
    %cst_13 = arith.constant dense<0.000000e+00> : vector<32x128xf32>
    %15 = tpu.matmul %12, %14, %cst_13 {dimension_numbers = #tpu.dot_dimension_numbers<[1], [0], [0], [1], [0, 0, 1, 1], [], []>} : vector<32x9xf32>, vector<9x128xf32>, vector<32x128xf32> -> vector<32x128xf32>
    %c0_14 = arith.constant 0 : index
    %c0_15 = arith.constant 0 : index
    %16 = vector.load %arg3[%c0_14, %c0_15] : memref<32x1xf32, #tpu.memory_space<vmem>>, vector<32x1xf32>
    %17 = vector.broadcast %16 : vector<32x1xf32> to vector<32x128xf32>
    %18 = arith.mulf %15, %17 : vector<32x128xf32>
    %c0_16 = arith.constant 0 : index
    %c0_17 = arith.constant 0 : index
    %19 = vector.load %arg4[%c0_16, %c0_17] : memref<32x1xf32, #tpu.memory_space<vmem>>, vector<32x1xf32>
    %20 = vector.broadcast %19 : vector<32x1xf32> to vector<32x128xf32>
    %21 = arith.addf %18, %20 : vector<32x128xf32>
    %cst_18 = arith.constant 0.000000e+00 : f32
    %22 = vector.broadcast %cst_18 : f32 to vector<32x128xf32>
    %23 = arith.maximumf %21, %22 : vector<32x128xf32>
    %24 = arith.maximumf %11, %23 : vector<32x128xf32>
    %c0_19 = arith.constant 0 : index
    %c0_20 = arith.constant 0 : index
    %25 = vector.load %arg2[%c0_19, %c0_20] : memref<32x9xf32, #tpu.memory_space<vmem>>, vector<32x9xf32>
    %c2 = arith.constant 2 : index
    %c0_21 = arith.constant 0 : index
    %c0_22 = arith.constant 0 : index
    %26 = vector.load %arg1[%c2, %c0_21, %c0_22] : memref<4x9x128xf32, #tpu.memory_space<vmem>>, vector<1x9x128xf32>
    %27 = vector.shape_cast %26 : vector<1x9x128xf32> to vector<9x128xf32>
    %cst_23 = arith.constant dense<0.000000e+00> : vector<32x128xf32>
    %28 = tpu.matmul %25, %27, %cst_23 {dimension_numbers = #tpu.dot_dimension_numbers<[1], [0], [0], [1], [0, 0, 1, 1], [], []>} : vector<32x9xf32>, vector<9x128xf32>, vector<32x128xf32> -> vector<32x128xf32>
    %c0_24 = arith.constant 0 : index
    %c0_25 = arith.constant 0 : index
    %29 = vector.load %arg3[%c0_24, %c0_25] : memref<32x1xf32, #tpu.memory_space<vmem>>, vector<32x1xf32>
    %30 = vector.broadcast %29 : vector<32x1xf32> to vector<32x128xf32>
    %31 = arith.mulf %28, %30 : vector<32x128xf32>
    %c0_26 = arith.constant 0 : index
    %c0_27 = arith.constant 0 : index
    %32 = vector.load %arg4[%c0_26, %c0_27] : memref<32x1xf32, #tpu.memory_space<vmem>>, vector<32x1xf32>
    %33 = vector.broadcast %32 : vector<32x1xf32> to vector<32x128xf32>
    %34 = arith.addf %31, %33 : vector<32x128xf32>
    %cst_28 = arith.constant 0.000000e+00 : f32
    %35 = vector.broadcast %cst_28 : f32 to vector<32x128xf32>
    %36 = arith.maximumf %34, %35 : vector<32x128xf32>
    %37 = arith.maximumf %24, %36 : vector<32x128xf32>
    %c0_29 = arith.constant 0 : index
    %c0_30 = arith.constant 0 : index
    %38 = vector.load %arg2[%c0_29, %c0_30] : memref<32x9xf32, #tpu.memory_space<vmem>>, vector<32x9xf32>
    %c3 = arith.constant 3 : index
    %c0_31 = arith.constant 0 : index
    %c0_32 = arith.constant 0 : index
    %39 = vector.load %arg1[%c3, %c0_31, %c0_32] : memref<4x9x128xf32, #tpu.memory_space<vmem>>, vector<1x9x128xf32>
    %40 = vector.shape_cast %39 : vector<1x9x128xf32> to vector<9x128xf32>
    %cst_33 = arith.constant dense<0.000000e+00> : vector<32x128xf32>
    %41 = tpu.matmul %38, %40, %cst_33 {dimension_numbers = #tpu.dot_dimension_numbers<[1], [0], [0], [1], [0, 0, 1, 1], [], []>} : vector<32x9xf32>, vector<9x128xf32>, vector<32x128xf32> -> vector<32x128xf32>
    %c0_34 = arith.constant 0 : index
    %c0_35 = arith.constant 0 : index
    %42 = vector.load %arg3[%c0_34, %c0_35] : memref<32x1xf32, #tpu.memory_space<vmem>>, vector<32x1xf32>
    %43 = vector.broadcast %42 : vector<32x1xf32> to vector<32x128xf32>
    %44 = arith.mulf %41, %43 : vector<32x128xf32>
    %c0_36 = arith.constant 0 : index
    %c0_37 = arith.constant 0 : index
    %45 = vector.load %arg4[%c0_36, %c0_37] : memref<32x1xf32, #tpu.memory_space<vmem>>, vector<32x1xf32>
    %46 = vector.broadcast %45 : vector<32x1xf32> to vector<32x128xf32>
    %47 = arith.addf %44, %46 : vector<32x128xf32>
    %cst_38 = arith.constant 0.000000e+00 : f32
    %48 = vector.broadcast %cst_38 : f32 to vector<32x128xf32>
    %49 = arith.maximumf %47, %48 : vector<32x128xf32>
    %50 = arith.maximumf %37, %49 : vector<32x128xf32>
    %c0_39 = arith.constant 0 : index
    %c0_40 = arith.constant 0 : index
    %51 = vector.load %arg5[%c0_39, %c0_40] : memref<1280x32xbf16, #tpu.memory_space<vmem>>, vector<1280x32xbf16>
    %52 = arith.truncf %50 : vector<32x128xf32> to vector<32x128xbf16>
    %cst_41 = arith.constant dense<0.000000e+00> : vector<1280x128xf32>
    %53 = tpu.matmul %51, %52, %cst_41 {dimension_numbers = #tpu.dot_dimension_numbers<[1], [0], [0], [1], [0, 0, 1, 1], [], []>} : vector<1280x32xbf16>, vector<32x128xbf16>, vector<1280x128xf32> -> vector<1280x128xf32>
    %c0_42 = arith.constant 0 : index
    %c0_43 = arith.constant 0 : index
    %54 = vector.load %arg6[%c0_42, %c0_43] : memref<1280x1xf32, #tpu.memory_space<vmem>>, vector<1280x1xf32>
    %55 = vector.broadcast %54 : vector<1280x1xf32> to vector<1280x128xf32>
    %56 = arith.addf %53, %55 : vector<1280x128xf32>
    %c0_44 = arith.constant 0 : index
    %c0_45 = arith.constant 0 : index
    %57 = vector.load %arg7[%c0_44, %c0_45] : memref<1280x128xf32, #tpu.memory_space<vmem>>, vector<1280x128xf32>
    tpu.vector_store %arg7[%c0_44, %c0_45], %56 {strides = array<i32>} : memref<1280x128xf32, #tpu.memory_space<vmem>>, vector<1280x128xf32>,
    return
  }
  func.func @transform_0(%arg0: i32) -> (i32, i32, i32) {
    %c0_i32 = arith.constant 0 : i32
    %c0_i32_0 = arith.constant 0 : i32
    %c0_i32_1 = arith.constant 0 : i32
    return %c0_i32, %c0_i32_0, %arg0 : i32, i32, i32
  }
  func.func @transform_1(%arg0: i32) -> (i32, i32) {
    %c0_i32 = arith.constant 0 : i32
    %c0_i32_0 = arith.constant 0 : i32
    %c0_i32_1 = arith.constant 0 : i32
    return %c0_i32, %c0_i32_0 : i32, i32
  }
  func.func @transform_2(%arg0: i32) -> (i32, i32) {
    %c0_i32 = arith.constant 0 : i32
    %c0_i32_0 = arith.constant 0 : i32
    %c0_i32_1 = arith.constant 0 : i32
    return %c0_i32, %c0_i32_0 : i32, i32
  }
  func.func @transform_3(%arg0: i32) -> (i32, i32) {
    %c0_i32 = arith.constant 0 : i32
    %c0_i32_0 = arith.constant 0 : i32
    %c0_i32_1 = arith.constant 0 : i32
    return %c0_i32, %c0_i32_0 : i32, i32
  }
  func.func @transform_4(%arg0: i32) -> (i32, i32) {
    %c0_i32 = arith.constant 0 : i32
    %c0_i32_0 = arith.constant 0 : i32
    %c0_i32_1 = arith.constant 0 : i32
    return %c0_i32, %c0_i32_0 : i32, i32
  }
  func.func @transform_5(%arg0: i32) -> (i32, i32) {
    %c0_i32 = arith.constant 0 : i32
    %c0_i32_0 = arith.constant 0 : i32
    %c0_i32_1 = arith.constant 0 : i32
    return %c0_i32, %c0_i32_0 : i32, i32
  }
  func.func @transform_6(%arg0: i32) -> (i32, i32) {
    %c0_i32 = arith.constant 0 : i32
    %c0_i32_0 = arith.constant 0 : i32
    return %c0_i32, %arg0 : i32, i32
  }
}

</mosaic_0001>

<bundles_post_ra>
// kernel: tpu_custom_call.1
= control target key start
LH: loop header
LB: loop body
LE: loop exit
PB: predicated region body
PF: predicated region fallthrough
CT: control target
= control target key end

     0   :  { %vm44_vm0 = vcmask 1040384   ;;  %v3761_v3 = vmov 0   ;;  %vm3762_vm1 = vmmov 1   ;;  %vm31_vm3 = vcmask 72704   ;;  %s5213_s0 = inlined_call_operand.vmem [shape: f32[4,9,128], index: 0, kind: input, shape index: {}]   ;;  %s5214_s1 = inlined_call_operand.vmem [shape: f32[32,9], index: 1, kind: input, shape index: {}]   ;;  %s5215_s2 = inlined_call_operand.vmem [shape: f32[32,1], index: 2, kind: input, shape index: {}]   ;;  %s5216_s3 = inlined_call_operand.vmem [shape: f32[32,1], index: 3, kind: input, shape index: {}]   ;;  %s5217_s4 = inlined_call_operand.vmem [shape: bf16[1280,32], index: 4, kind: input, shape index: {}]   ;;  %s5218_s5 = inlined_call_operand.vmem [shape: f32[1280,1], index: 5, kind: input, shape index: {}]   ;;  %s5219_s6 = inlined_call_operand.hbm [shape: f32[1280,128], index: 6, kind: output, shape index: {}]  }
   0x1   :  { %v135_v0 = vld [vmem:[%s5215_s2 + $0x10] sm:$0xff]  ;;  %v133_v1 = vld [vmem:[%s5215_s2] sm:$0xff]  ;;  %3656 = vset.pattern.permute.xlu1 %v3761_v3  ;;  %3655 = vset.pattern.permute.xlu0 %v3761_v3  ;;  %v30_v4 = vld [vmem:[%s5213_s0 + $0x8] sm:$0x1] }
   0x2   :  { %v29_v2 = vld [vmem:[%s5213_s0] sm:$0xff]  ;;  %vm3813_vm2 = vmpackc.low %vm44_vm0, %vm3762_vm1  ;;  %v3131_v6 = vld [vmem:[%s5213_s0 + $0x10] sm:$0xff]  ;;  %149 = vperm.xlu1 %3656, %v135_v0   ;;  %139 = vperm.xlu0 %3655, %v133_v1  }
   0x3   :  { %v3622_v7 = vpack.c.bf16 %v30_v4, %v29_v2  ;;  %v3132_v8 = vld [vmem:[%s5213_s0 + $0x18] sm:$0x1]  ;;  %v134_v11 = vld [vmem:[%s5215_s2 + $0x8] sm:$0xff]  ;;  %v25_v12 = vld [vmem:[%s5214_s1] sm:$0xff] }
   0x4   :  { %v136_v9 = vld [vmem:[%s5215_s2 + $0x18] sm:$0xff]  ;;  %v3628_v10 = vpack.c.bf16 %v3132_v8, %v3131_v6  ;;  %v3138_v13 = vld [vmem:[%s5213_s0 + $0x20] sm:$0xff]  ;;  %3422 = vmatprep.mubr.msk.f32.mxu0 %vm31_vm3, %v25_v12  ;;  %v3139_v14 = vld [vmem:[%s5213_s0 + $0x28] sm:$0x1]  ;;  %3432 = vmatprep.mubr.msk.f32.mxu1 %vm31_vm3, %v25_v12 }
   0x5   :  { %3624 = vmatprep.subr.msk.bf16.mxu0 %vm3813_vm2, %v3622_v7  ;;  %v3145_v15 = vld [vmem:[%s5213_s0 + $0x30] sm:$0xff]  ;;  %v3146_v16 = vld [vmem:[%s5213_s0 + $0x38] sm:$0x1]  ;;  %v26_v17 = vld [vmem:[%s5214_s1 + $0x8] sm:$0xff]  ;;  %v3634_v18 = vpack.c.bf16 %v3139_v14, %v3138_v13 }
   0x6   :  { %3630 = vmatprep.subr.msk.bf16.mxu1 %vm3813_vm2, %v3628_v10  ;;  %3627 = vmatpush3.bf16.msk.msra.mxu0 %vm3813_vm2, %v3622_v7  ;;  %v3640_v19 = vpack.c.bf16 %v3146_v16, %v3145_v15  ;;  %v162_v20 = vld [vmem:[%s5216_s3 + $0x8] sm:$0xff]  ;;  %v161_v21 = vld [vmem:[%s5216_s3] sm:$0xff]  ;;  %v27_v22 = vld [vmem:[%s5214_s1 + $0x10] sm:$0xff] }
   0x7   :  { %3633 = vmatpush3.bf16.msk.msra.mxu1 %vm3813_vm2, %v3628_v10  ;;  %154 = vperm.xlu1 %3656, %v136_v9   ;;  %v28_v23 = vld [vmem:[%s5214_s1 + $0x18] sm:$0xff]  ;;  %v163_v25 = vld [vmem:[%s5216_s3 + $0x10] sm:$0xff]  ;;  %v677_v26 = vld [vmem:[%s5218_s5 + $0x8] sm:$0xff] }
   0x8   :  { %144 = vperm.xlu0 %3655, %v134_v11   ;;  %3636 = vmatprep.subr.msk.bf16.mxu0 %vm3813_vm2, %v3634_v18  ;;  %v164_v24 = vld [vmem:[%s5216_s3 + $0x18] sm:$0xff]  ;;  %v676_v27 = vld [vmem:[%s5218_s5] sm:$0xff]  ;;  %v678_v29 = vld [vmem:[%s5218_s5 + $0x10] sm:$0xff] }
   0x9   :  { %3423 = vmatmul.mubr.msk.f32.vlgmr.msra.gmra.mrb[0].mxu0 %vm31_vm3, %v26_v17  ;;  %3642 = vmatprep.subr.msk.bf16.mxu1 %vm3813_vm2, %v3640_v19  ;;  %v679_v28 = vld [vmem:[%s5218_s5 + $0x18] sm:$0xff]  ;;  %v681_v30 = vld [vmem:[%s5218_s5 + $0x28] sm:$0xff]  ;;  %v680_v31 = vld [vmem:[%s5218_s5 + $0x20] sm:$0xff] }
   0xa   :  { %3433 = vmatmul.mubr.msk.f32.vlgmr.msra.gmra.mrb[0].mxu1 %vm31_vm3, %v26_v17  ;;  %3639 = vmatpush3.bf16.msk.msra.mxu0 %vm3813_vm2, %v3634_v18  ;;  %v683_v32 = vld [vmem:[%s5218_s5 + $0x38] sm:$0xff]  ;;  %v682_v33 = vld [vmem:[%s5218_s5 + $0x30] sm:$0xff]  ;;  %v685_v34 = vld [vmem:[%s5218_s5 + $0x48] sm:$0xff] }
   0xb   :  { %172 = vperm.xlu1 %3656, %v162_v20   ;;  %3425 = vmatprep.mubr.msk.f32.mxu0 %vm31_vm3, %v27_v22  ;;  %v684_v35 = vld [vmem:[%s5218_s5 + $0x40] sm:$0xff]  ;;  %v687_v36 = vld [vmem:[%s5218_s5 + $0x58] sm:$0xff]  ;;  %v686_v37 = vld [vmem:[%s5218_s5 + $0x50] sm:$0xff] }
   0xc   :  { %167 = vperm.xlu0 %3655, %v161_v21   ;;  %3435 = vmatprep.mubr.msk.f32.mxu1 %vm31_vm3, %v27_v22  ;;  %v689_v38 = vld [vmem:[%s5218_s5 + $0x68] sm:$0xff]  ;;  %v688_v39 = vld [vmem:[%s5218_s5 + $0x60] sm:$0xff]  ;;  %v691_v40 = vld [vmem:[%s5218_s5 + $0x78] sm:$0xff] }
   0xd   :  { %3645 = vmatpush3.bf16.msk.msra.mxu1 %vm3813_vm2, %v3640_v19  ;;  %3426 = vmatmul.mubr.msk.f32.gmra.mrb[2].mxu0 %vm31_vm3, %v28_v23  ;;  %v690_v41 = vld [vmem:[%s5218_s5 + $0x70] sm:$0xff]  ;;  %v693_v42 = vld [vmem:[%s5218_s5 + $0x88] sm:$0xff]  ;;  %v692_v43 = vld [vmem:[%s5218_s5 + $0x80] sm:$0xff] }
   0xe   :  { %3436 = vmatmul.mubr.msk.f32.gmra.mrb[2].mxu1 %vm31_vm3, %v28_v23  ;;  %3442 = vmatprep.mubr.msk.f32.mxu0 %vm31_vm3, %v25_v12  ;;  %v695_v44 = vld [vmem:[%s5218_s5 + $0x98] sm:$0xff]  ;;  %v694_v45 = vld [vmem:[%s5218_s5 + $0x90] sm:$0xff]  ;;  %v697_v46 = vld [vmem:[%s5218_s5 + $0xa8] sm:$0xff] }
   0xf   :  { %182 = vperm.xlu1 %3656, %v164_v24   ;;  %3452 = vmatprep.mubr.msk.f32.mxu1 %vm31_vm3, %v25_v12  ;;  %v696_v47 = vld [vmem:[%s5218_s5 + $0xa0] sm:$0xff]  ;;  %v699_v48 = vld [vmem:[%s5218_s5 + $0xb8] sm:$0xff]  ;;  %v698_v49 = vld [vmem:[%s5218_s5 + $0xb0] sm:$0xff] }
  0x10   :  { %177 = vperm.xlu0 %3655, %v163_v25   ;;  %v701_v50 = vld [vmem:[%s5218_s5 + $0xc8] sm:$0xff]  ;;  %v700_v51 = vld [vmem:[%s5218_s5 + $0xc0] sm:$0xff]  ;;  %v703_v52 = vld [vmem:[%s5218_s5 + $0xd8] sm:$0xff] }
  0x11   :  { %3443 = vmatmul.mubr.msk.f32.vlgmr.msra.gmra.mrb[4].mxu0 %vm31_vm3, %v26_v17  ;;  %v702_v53 = vld [vmem:[%s5218_s5 + $0xd0] sm:$0xff]  ;;  %v705_v54 = vld [vmem:[%s5218_s5 + $0xe8] sm:$0xff]  ;;  %v704_v55 = vld [vmem:[%s5218_s5 + $0xe0] sm:$0xff] }
  0x12   :  { %3453 = vmatmul.mubr.msk.f32.vlgmr.msra.gmra.mrb[4].mxu1 %vm31_vm3, %v26_v17  ;;  %3445 = vmatprep.mubr.msk.f32.mxu0 %vm31_vm3, %v27_v22  ;;  %v707_v56 = vld [vmem:[%s5218_s5 + $0xf8] sm:$0xff]  ;;  %v706_v57 = vld [vmem:[%s5218_s5 + $0xf0] sm:$0xff]  ;;  %v709_v58 = vld [vmem:[%s5218_s5 + $0x108] sm:$0xff] }
  0x13   :  { %843 = vperm.xlu1 %3656, %v677_v26   ;;  %3455 = vmatprep.mubr.msk.f32.mxu1 %vm31_vm3, %v27_v22  ;;  %v708_v59 = vld [vmem:[%s5218_s5 + $0x100] sm:$0xff]  ;;  %v711_v60 = vld [vmem:[%s5218_s5 + $0x118] sm:$0xff]  ;;  %v710_v61 = vld [vmem:[%s5218_s5 + $0x110] sm:$0xff] }
  0x14   :  { %838 = vperm.xlu0 %3655, %v676_v27   ;;  %v713_v62 = vld [vmem:[%s5218_s5 + $0x128] sm:$0xff]  ;;  %v712_v63 = vld [vmem:[%s5218_s5 + $0x120] sm:$0xff]  ;;  %v715_v0 = vld [vmem:[%s5218_s5 + $0x138] sm:$0xff] }
  0x15   :  { %3446 = vmatmul.mubr.msk.f32.gmra.mrb[6].mxu0 %vm31_vm3, %v28_v23  ;;  %v714_v1 = vld [vmem:[%s5218_s5 + $0x130] sm:$0xff] }
  0x16   :  { %3456 = vmatmul.mubr.msk.f32.gmra.mrb[6].mxu1 %vm31_vm3, %v28_v23 }
  0x17   :  { %853 = vperm.xlu1 %3656, %v679_v28  }
  0x18   :  { %848 = vperm.xlu0 %3655, %v678_v29  }
  0x1b   :  { %863 = vperm.xlu1 %3656, %v681_v30  }
  0x1c   :  { %858 = vperm.xlu0 %3655, %v680_v31  }
  0x1f   :  { %873 = vperm.xlu1 %3656, %v683_v32  }
  0x20   :  { %868 = vperm.xlu0 %3655, %v682_v33  }
  0x23   :  { %883 = vperm.xlu1 %3656, %v685_v34  }
  0x24   :  { %878 = vperm.xlu0 %3655, %v684_v35  }
  0x27   :  { %893 = vperm.xlu1 %3656, %v687_v36  }
  0x28   :  { %888 = vperm.xlu0 %3655, %v686_v37  }
  0x2b   :  { %903 = vperm.xlu1 %3656, %v689_v38  }
  0x2c   :  { %898 = vperm.xlu0 %3655, %v688_v39  }
  0x2f   :  { %913 = vperm.xlu1 %3656, %v691_v40  }
  0x30   :  { %908 = vperm.xlu0 %3655, %v690_v41  }
  0x33   :  { %923 = vperm.xlu1 %3656, %v693_v42  }
  0x34   :  { %918 = vperm.xlu0 %3655, %v692_v43  }
  0x37   :  { %933 = vperm.xlu1 %3656, %v695_v44  }
  0x38   :  { %928 = vperm.xlu0 %3655, %v694_v45  }
  0x3b   :  { %943 = vperm.xlu1 %3656, %v697_v46  }
  0x3c   :  { %938 = vperm.xlu0 %3655, %v696_v47  }
  0x3f   :  { %953 = vperm.xlu1 %3656, %v699_v48  }
  0x40   :  { %948 = vperm.xlu0 %3655, %v698_v49  }
  0x43   :  { %963 = vperm.xlu1 %3656, %v701_v50  }
  0x44   :  { %958 = vperm.xlu0 %3655, %v700_v51  }
  0x47   :  { %973 = vperm.xlu1 %3656, %v703_v52  }
  0x48   :  { %968 = vperm.xlu0 %3655, %v702_v53  }
  0x4b   :  { %983 = vperm.xlu1 %3656, %v705_v54  }
  0x4c   :  { %978 = vperm.xlu0 %3655, %v704_v55  }
  0x4f   :  { %993 = vperm.xlu1 %3656, %v707_v56  }
  0x50   :  { %988 = vperm.xlu0 %3655, %v706_v57  }
  0x53   :  { %1003 = vperm.xlu1 %3656, %v709_v58  }
  0x54   :  { %998 = vperm.xlu0 %3655, %v708_v59  }
  0x57   :  { %1013 = vperm.xlu1 %3656, %v711_v60  }
  0x58   :  { %1008 = vperm.xlu0 %3655, %v710_v61  }
  0x5b   :  { %1023 = vperm.xlu1 %3656, %v713_v62  }
  0x5c   :  { %1018 = vperm.xlu0 %3655, %v712_v63  }
  0x5f   :  { %1033 = vperm.xlu1 %3656, %v715_v0  }
  0x60   :  { %11 = vsyncpa [#allocation3], 0  ;;  %1028 = vperm.xlu0 %3655, %v714_v1   ;;  %v717_v2 = vld [vmem:[%s5218_s5 + $0x148] sm:$0xff]  ;;  %v716_v3 = vld [vmem:[%s5218_s5 + $0x140] sm:$0xff]  ;;  %vm2036_vm4 = vcmask 261120  }
  0x61   :  { %v719_v4 = vld [vmem:[%s5218_s5 + $0x158] sm:$0xff]  ;;  %v718_v5 = vld [vmem:[%s5218_s5 + $0x150] sm:$0xff]  ;;  %v721_v6 = vld [vmem:[%s5218_s5 + $0x168] sm:$0xff] }
  0x62   :  { %v720_v7 = vld [vmem:[%s5218_s5 + $0x160] sm:$0xff]  ;;  %v723_v8 = vld [vmem:[%s5218_s5 + $0x178] sm:$0xff]  ;;  %v722_v9 = vld [vmem:[%s5218_s5 + $0x170] sm:$0xff] }
  0x63   :  { %1043 = vperm.xlu1 %3656, %v717_v2   ;;  %v725_v10 = vld [vmem:[%s5218_s5 + $0x188] sm:$0xff]  ;;  %v724_v11 = vld [vmem:[%s5218_s5 + $0x180] sm:$0xff]  ;;  %v727_v12 = vld [vmem:[%s5218_s5 + $0x198] sm:$0xff] }
  0x64   :  { %1038 = vperm.xlu0 %3655, %v716_v3   ;;  %v726_v13 = vld [vmem:[%s5218_s5 + $0x190] sm:$0xff]  ;;  %v729_v14 = vld [vmem:[%s5218_s5 + $0x1a8] sm:$0xff]  ;;  %v3657_v15 = vld [vmem:[%s5217_s4] sm:$0xff]  }
  0x65   :  { %v728_v16 = vld [vmem:[%s5218_s5 + $0x1a0] sm:$0xff]  ;;  %3462 = vmatprep.mubr.msk.bf16.mxu0 %vm2036_vm4, %v3657_v15  ;;  %v731_v18 = vld [vmem:[%s5218_s5 + $0x1b8] sm:$0xff]  ;;  %v730_v19 = vld [vmem:[%s5218_s5 + $0x1b0] sm:$0xff] }
  0x66   :  { %v3658_v17 = vld [vmem:[%s5217_s4 + $0x140] sm:$0xff]   ;;  %v733_v20 = vld [vmem:[%s5218_s5 + $0x1c8] sm:$0xff]  ;;  %v735_v24 = vld [vmem:[%s5218_s5 + $0x1d8] sm:$0xff] }
  0x67   :  { %1053 = vperm.xlu1 %3656, %v719_v4   ;;  %3542 = vmatprep.mubr.msk.bf16.mxu1 %vm2036_vm4, %v3658_v17  ;;  %v732_v21 = vld [vmem:[%s5218_s5 + $0x1c0] sm:$0xff]  ;;  %v734_v25 = vld [vmem:[%s5218_s5 + $0x1d0] sm:$0xff]  ;;  %v737_v28 = vld [vmem:[%s5218_s5 + $0x1e8] sm:$0xff] }
  0x68   :  { %1048 = vperm.xlu0 %3655, %v718_v5   ;;  %v736_v29 = vld [vmem:[%s5218_s5 + $0x1e0] sm:$0xff]  ;;  %v739_v32 = vld [vmem:[%s5218_s5 + $0x1f8] sm:$0xff]  ;;  %v738_v33 = vld [vmem:[%s5218_s5 + $0x1f0] sm:$0xff] }
  0x69   :  { %v741_v36 = vld [vmem:[%s5218_s5 + $0x208] sm:$0xff]  ;;  %v740_v37 = vld [vmem:[%s5218_s5 + $0x200] sm:$0xff]  ;;  %v743_v40 = vld [vmem:[%s5218_s5 + $0x218] sm:$0xff] }
  0x6a   :  { %v742_v41 = vld [vmem:[%s5218_s5 + $0x210] sm:$0xff]  ;;  %v745_v44 = vld [vmem:[%s5218_s5 + $0x228] sm:$0xff]  ;;  %v744_v45 = vld [vmem:[%s5218_s5 + $0x220] sm:$0xff] }
  0x6b   :  { %1063 = vperm.xlu1 %3656, %v721_v6   ;;  %v747_v48 = vld [vmem:[%s5218_s5 + $0x238] sm:$0xff]  ;;  %v746_v49 = vld [vmem:[%s5218_s5 + $0x230] sm:$0xff]  ;;  %v749_v52 = vld [vmem:[%s5218_s5 + $0x248] sm:$0xff] }
  0x6c   :  { %1058 = vperm.xlu0 %3655, %v720_v7   ;;  %v748_v53 = vld [vmem:[%s5218_s5 + $0x240] sm:$0xff]  ;;  %v751_v56 = vld [vmem:[%s5218_s5 + $0x258] sm:$0xff]  ;;  %v750_v57 = vld [vmem:[%s5218_s5 + $0x250] sm:$0xff] }
  0x6d   :  { %v753_v60 = vld [vmem:[%s5218_s5 + $0x268] sm:$0xff]  ;;  %v752_v61 = vld [vmem:[%s5218_s5 + $0x260] sm:$0xff]  ;;  %v755_v0 = vld [vmem:[%s5218_s5 + $0x278] sm:$0xff] }
  0x6e   :  { %v754_v1 = vld [vmem:[%s5218_s5 + $0x270] sm:$0xff]  ;;  %v757_v4 = vld [vmem:[%s5218_s5 + $0x288] sm:$0xff]  ;;  %v756_v5 = vld [vmem:[%s5218_s5 + $0x280] sm:$0xff] }
  0x6f   :  { %1073 = vperm.xlu1 %3656, %v723_v8   ;;  %v759_v8 = vld [vmem:[%s5218_s5 + $0x298] sm:$0xff]  ;;  %v762_v17 = vld [vmem:[%s5218_s5 + $0x2b0] sm:$0xff] }
  0x70   :  { %1068 = vperm.xlu0 %3655, %v722_v9   ;;  %v758_v9 = vld [vmem:[%s5218_s5 + $0x290] sm:$0xff] }
  0x73   :  { %1083 = vperm.xlu1 %3656, %v725_v10  }
  0x74   :  { %1078 = vperm.xlu0 %3655, %v724_v11  }
  0x77   :  { %1093 = vperm.xlu1 %3656, %v727_v12   ;;  %v761_v12 = vld [vmem:[%s5218_s5 + $0x2a8] sm:$0xff] }
  0x78   :  { %1088 = vperm.xlu0 %3655, %v726_v13   ;;  %v760_v13 = vld [vmem:[%s5218_s5 + $0x2a0] sm:$0xff] }
  0x7b   :  { %1103 = vperm.xlu1 %3656, %v729_v14  }
  0x7c   :  { %1098 = vperm.xlu0 %3655, %v728_v16   ;;  %v763_v16 = vld [vmem:[%s5218_s5 + $0x2b8] sm:$0xff] }
  0x7f   :  { %1113 = vperm.xlu1 %3656, %v731_v18  }
  0x80   :  { %1108 = vperm.xlu0 %3655, %v730_v19  }
  0x81   :  { %v4079_v22 = vpop.permute.xlu1 %149  ;;  %v4081_v23 = vpop.permute.xlu0 %139 }
  0x83   :  { %1123 = vperm.xlu1 %3656, %v733_v20   ;;  %v765_v20 = vld [vmem:[%s5218_s5 + $0x2c8] sm:$0xff] }
  0x84   :  { %1118 = vperm.xlu0 %3655, %v732_v21   ;;  %v764_v21 = vld [vmem:[%s5218_s5 + $0x2c0] sm:$0xff] }
  0x86   :  { %v4089_v26 = vpop.permute.xlu1 %154 }
  0x87   :  { %v4091_v27 = vpop.permute.xlu0 %144  ;;  %1133 = vperm.xlu1 %3656, %v735_v24  }
  0x88   :  { %1128 = vperm.xlu0 %3655, %v734_v25  }
  0x8a   :  { %v4099_v30 = vpop.permute.xlu1 %172 }
  0x8b   :  { %v4101_v31 = vpop.permute.xlu0 %167  ;;  %1143 = vperm.xlu1 %3656, %v737_v28   ;;  %v767_v28 = vld [vmem:[%s5218_s5 + $0x2d8] sm:$0xff] }
  0x8c   :  { %1138 = vperm.xlu0 %3655, %v736_v29   ;;  %v766_v29 = vld [vmem:[%s5218_s5 + $0x2d0] sm:$0xff] }
  0x8e   :  { %v4109_v34 = vpop.permute.xlu1 %182 }
  0x8f   :  { %v4111_v35 = vpop.permute.xlu0 %177  ;;  %1153 = vperm.xlu1 %3656, %v739_v32  }
  0x90   :  { %1148 = vperm.xlu0 %3655, %v738_v33  }
  0x92   :  { %v4119_v38 = vpop.permute.xlu1 %843 }
  0x93   :  { %v4121_v39 = vpop.permute.xlu0 %838  ;;  %1163 = vperm.xlu1 %3656, %v741_v36   ;;  %v769_v36 = vld [vmem:[%s5218_s5 + $0x2e8] sm:$0xff] }
  0x94   :  { %1158 = vperm.xlu0 %3655, %v740_v37   ;;  %v768_v37 = vld [vmem:[%s5218_s5 + $0x2e0] sm:$0xff] }
  0x96   :  { %v4129_v42 = vpop.permute.xlu1 %853 }
  0x97   :  { %v4131_v43 = vpop.permute.xlu0 %848  ;;  %1173 = vperm.xlu1 %3656, %v743_v40  }
  0x98   :  { %1168 = vperm.xlu0 %3655, %v742_v41  }
  0x9a   :  { %v4139_v46 = vpop.permute.xlu1 %863 }
  0x9b   :  { %v4141_v47 = vpop.permute.xlu0 %858  ;;  %1183 = vperm.xlu1 %3656, %v745_v44   ;;  %v771_v44 = vld [vmem:[%s5218_s5 + $0x2f8] sm:$0xff] }
  0x9c   :  { %1178 = vperm.xlu0 %3655, %v744_v45   ;;  %v770_v45 = vld [vmem:[%s5218_s5 + $0x2f0] sm:$0xff] }
  0x9e   :  { %v4149_v50 = vpop.permute.xlu1 %873 }
  0x9f   :  { %v4151_v51 = vpop.permute.xlu0 %868  ;;  %1193 = vperm.xlu1 %3656, %v747_v48  }
  0xa0   :  { %1188 = vperm.xlu0 %3655, %v746_v49  }
  0xa2   :  { %v4159_v54 = vpop.permute.xlu1 %883 }
  0xa3   :  { %v4161_v55 = vpop.permute.xlu0 %878  ;;  %1203 = vperm.xlu1 %3656, %v749_v52   ;;  %v773_v52 = vld [vmem:[%s5218_s5 + $0x308] sm:$0xff] }
  0xa4   :  { %1198 = vperm.xlu0 %3655, %v748_v53   ;;  %v772_v53 = vld [vmem:[%s5218_s5 + $0x300] sm:$0xff] }
  0xa6   :  { %v4169_v58 = vpop.permute.xlu1 %893 }
  0xa7   :  { %v4171_v59 = vpop.permute.xlu0 %888  ;;  %1213 = vperm.xlu1 %3656, %v751_v56  }
  0xa8   :  { %1208 = vperm.xlu0 %3655, %v750_v57  }
  0xaa   :  { %v4179_v62 = vpop.permute.xlu1 %903 }
  0xab   :  { %v4181_v63 = vpop.permute.xlu0 %898  ;;  %1223 = vperm.xlu1 %3656, %v753_v60   ;;  %v775_v60 = vld [vmem:[%s5218_s5 + $0x318] sm:$0xff] }
  0xac   :  { %1218 = vperm.xlu0 %3655, %v752_v61   ;;  %v774_v61 = vld [vmem:[%s5218_s5 + $0x310] sm:$0xff] }
  0xae   :  { %v4189_v2 = vpop.permute.xlu1 %913 }
  0xaf   :  { %v4191_v3 = vpop.permute.xlu0 %908  ;;  %1233 = vperm.xlu1 %3656, %v755_v0  }
  0xb0   :  { %1228 = vperm.xlu0 %3655, %v754_v1  }
  0xb2   :  { %v4199_v6 = vpop.permute.xlu1 %923 }
  0xb3   :  { %v4201_v7 = vpop.permute.xlu0 %918  ;;  %1243 = vperm.xlu1 %3656, %v757_v4   ;;  %v777_v4 = vld [vmem:[%s5218_s5 + $0x328] sm:$0xff] }
  0xb4   :  { %1238 = vperm.xlu0 %3655, %v756_v5   ;;  %v776_v5 = vld [vmem:[%s5218_s5 + $0x320] sm:$0xff] }
  0xb6   :  { %v4209_v10 = vpop.permute.xlu1 %933 }
  0xb7   :  { %v4211_v11 = vpop.permute.xlu0 %928  ;;  %1253 = vperm.xlu1 %3656, %v759_v8  }
  0xb8   :  { %1248 = vperm.xlu0 %3655, %v758_v9  }
  0xba   :  { %v4219_v14 = vpop.permute.xlu1 %943 }
  0xbb   :  { %v4221_v15 = vpop.permute.xlu0 %938  ;;  %1263 = vperm.xlu1 %3656, %v761_v12  }
  0xbc   :  { %1258 = vperm.xlu0 %3655, %v760_v13   ;;  %v779_v13 = vld [vmem:[%s5218_s5 + $0x338] sm:$0xff] }
  0xbe   :  { %v4229_v18 = vpop.permute.xlu1 %953 }
  0xbf   :  { %v4231_v19 = vpop.permute.xlu0 %948  ;;  %1273 = vperm.xlu1 %3656, %v763_v16  }
  0xc0   :  { %1268 = vperm.xlu0 %3655, %v762_v17  }
  0xc2   :  { %v4239_v24 = vpop.permute.xlu1 %963 }
  0xc3   :  { %5222 = vst [vmem:[#allocation5_spill] sm:$0xff] %v4239_v24  ;;  %v4241_v25 = vpop.permute.xlu0 %958  ;;  %1283 = vperm.xlu1 %3656, %v765_v20  }
  0xc4   :  { %1278 = vperm.xlu0 %3655, %v764_v21   ;;  %v778_v21 = vld [vmem:[%s5218_s5 + $0x330] sm:$0xff] }
  0xc6   :  { %v4249_v32 = vpop.permute.xlu1 %973 }
  0xc7   :  { %5223 = vst [vmem:[#allocation6_spill] sm:$0xff] %v4249_v32  ;;  %v4251_v33 = vpop.permute.xlu0 %968  ;;  %1293 = vperm.xlu1 %3656, %v767_v28  }
  0xc8   :  { %1288 = vperm.xlu0 %3655, %v766_v29  }
  0xca   :  { %v4259_v40 = vpop.permute.xlu1 %983 }
  0xcb   :  { %5224 = vst [vmem:[#allocation7_spill] sm:$0xff] %v4259_v40  ;;  %v4261_v41 = vpop.permute.xlu0 %978  ;;  %1303 = vperm.xlu1 %3656, %v769_v36  }
  0xcc   :  { %5225 = vst [vmem:[#allocation8_spill] sm:$0xff] %v4261_v41  ;;  %1298 = vperm.xlu0 %3655, %v768_v37  }
  0xce   :  { %v4269_v48 = vpop.permute.xlu1 %993 }
  0xcf   :  { %5226 = vst [vmem:[#allocation9_spill] sm:$0xff] %v4269_v48  ;;  %v4271_v49 = vpop.permute.xlu0 %988  ;;  %1313 = vperm.xlu1 %3656, %v771_v44  }
  0xd0   :  { %5227 = vst [vmem:[#allocation10_spill] sm:$0xff] %v4271_v49  ;;  %1308 = vperm.xlu0 %3655, %v770_v45  }
  0xd2   :  { %v4279_v56 = vpop.permute.xlu1 %1003 }
  0xd3   :  { %5228 = vst [vmem:[#allocation11_spill] sm:$0xff] %v4279_v56  ;;  %v4281_v57 = vpop.permute.xlu0 %998  ;;  %1323 = vperm.xlu1 %3656, %v773_v52  }
  0xd4   :  { %5229 = vst [vmem:[#allocation12_spill] sm:$0xff] %v4281_v57  ;;  %1318 = vperm.xlu0 %3655, %v772_v53  }
  0xd6   :  { %v4289_v0 = vpop.permute.xlu1 %1013 }
  0xd7   :  { %5230 = vst [vmem:[#allocation13_spill] sm:$0xff] %v4289_v0  ;;  %v4291_v1 = vpop.permute.xlu0 %1008  ;;  %1333 = vperm.xlu1 %3656, %v775_v60  }
  0xd8   :  { %5231 = vst [vmem:[#allocation14_spill] sm:$0xff] %v4291_v1  ;;  %1328 = vperm.xlu0 %3655, %v774_v61   ;;  %v781_v61 = vld [vmem:[%s5218_s5 + $0x348] sm:$0xff] }
  0xda   :  { %v4299_v8 = vpop.permute.xlu1 %1023 }
  0xdb   :  { %5232 = vst [vmem:[#allocation15_spill] sm:$0xff] %v4299_v8  ;;  %v4301_v9 = vpop.permute.xlu0 %1018  ;;  %1343 = vperm.xlu1 %3656, %v777_v4  }
  0xdc   :  { %5233 = vst [vmem:[#allocation16_spill] sm:$0xff] %v4301_v9  ;;  %1338 = vperm.xlu0 %3655, %v776_v5   ;;  %v3424_v12 = vpop.f32.mrb[0].mxu0 }
  0xdd   :  { %v158_v16 = vmul.f32 %v3424_v12, %v4091_v27  ;;  %v3434_v17 = vpop.f32.mrb[0].mxu1  ;;  %v114_v20 = vpop.f32.mrb[1].mxu0 }
  0xde   :  { %v285_v28 = vmul.f32 %v3434_v17, %v4091_v27  ;;  %v157_v29 = vmul.f32 %v4081_v23, %v114_v20  ;;  %v265_v36 = vpop.f32.mrb[1].mxu1  ;;  %v4312_v37 = vpop.permute.xlu1 %1033 }
  0xdf   :  { %5234 = vst [vmem:[#allocation17_spill] sm:$0xff] %v4312_v37  ;;  %v186_v44 = vadd.f32 %v4099_v30, %v158_v16  ;;  %v284_v45 = vmul.f32 %v265_v36, %v4081_v23  ;;  %v4316_v52 = vpop.permute.xlu0 %1028  ;;  %1353 = vperm.xlu1 %3656, %v779_v13   ;;  %v780_v16 = vld [vmem:[%s5218_s5 + $0x340] sm:$0xff] }
  0xe0   :  { %5235 = vst [vmem:[#allocation18_spill] sm:$0xff] %v4316_v52  ;;  %v289_v53 = vadd.f32 %v285_v28, %v4099_v30  ;;  %v185_v60 = vadd.f32 %v4101_v31, %v157_v29  ;;  %1348 = vperm.xlu0 %3655, %v778_v21   ;;  %v3427_v12 = vpop.f32.mrb[2].mxu0 }
  0xe1   :  { %v190_v4 = vmax.f32 %v186_v44, 0.0  ;;  %v288_v5 = vadd.f32 %v284_v45, %v4101_v31  ;;  %v3437_v17 = vpop.f32.mrb[2].mxu1  ;;  %v160_v28 = vmul.f32 %v3427_v12, %v4089_v26  ;;  %v124_v21 = vpop.f32.mrb[3].mxu0  ;;  %v783_v12 = vld [vmem:[%s5218_s5 + $0x358] sm:$0xff] }
  0xe2   :  { %v293_v20 = vmax.f32 %v289_v53, 0.0  ;;  %v189_v13 = vmax.f32 %v185_v60, 0.0  ;;  %v287_v29 = vmul.f32 %v3437_v17, %v4089_v26  ;;  %v275_v36 = vpop.f32.mrb[3].mxu1  ;;  %v159_v37 = vmul.f32 %v4079_v22, %v124_v21  ;;  %v4331_v45 = vpop.permute.xlu1 %1043 }
  0xe3   :  { %v292_v8 = vmax.f32 %v288_v5, 0.0  ;;  %v286_v44 = vmul.f32 %v275_v36, %v4079_v22  ;;  %5236 = vst [vmem:[#allocation19_spill] sm:$0xff] %v4331_v45  ;;  %v4333_v9 = vpop.permute.xlu0 %1038  ;;  %1363 = vperm.xlu1 %3656, %v781_v61   ;;  %v188_v53 = vadd.f32 %v4109_v34, %v160_v28  ;;  %v782_v61 = vld [vmem:[%s5218_s5 + $0x350] sm:$0xff] }
  0xe4   :  { %5237 = vst [vmem:[#allocation20_spill] sm:$0xff] %v4333_v9  ;;  %v297_v52 = vmax.f32 %v190_v4, %v293_v20  ;;  %v291_v60 = vadd.f32 %v287_v29, %v4109_v34  ;;  %1358 = vperm.xlu0 %3655, %v780_v16   ;;  %v187_v17 = vadd.f32 %v4111_v35, %v159_v37  ;;  %v3444_v36 = vpop.f32.mrb[4].mxu0 }
  0xe5   :  { %v296_v5 = vmax.f32 %v189_v13, %v292_v8  ;;  %v290_v21 = vadd.f32 %v286_v44, %v4111_v35  ;;  %v3454_v45 = vpop.f32.mrb[4].mxu1  ;;  %v192_v4 = vmax.f32 %v188_v53, 0.0  ;;  %v392_v28 = vmul.f32 %v3444_v36, %v4091_v27  ;;  %v372_v29 = vpop.f32.mrb[5].mxu0 }
  0xe6   :  { %v295_v20 = vmax.f32 %v291_v60, 0.0  ;;  %v499_v16 = vmul.f32 %v3454_v45, %v4091_v27  ;;  %v479_v9 = vpop.f32.mrb[5].mxu1  ;;  %v191_v56 = vmax.f32 %v187_v17, 0.0  ;;  %v391_v37 = vmul.f32 %v372_v29, %v4081_v23  ;;  %v4349_v44 = vpop.permute.xlu1 %1053  ;;  %v785_v27 = vld [vmem:[%s5218_s5 + $0x368] sm:$0xff] }
  0xe7   :  { %v294_v8 = vmax.f32 %v290_v21, 0.0  ;;  %v498_v13 = vmul.f32 %v479_v9, %v4081_v23  ;;  %5238 = vst [vmem:[#allocation21_spill] sm:$0xff] %v4349_v44  ;;  %v4351_v0 = vpop.permute.xlu0 %1048  ;;  %1373 = vperm.xlu1 %3656, %v783_v12   ;;  %v396_v53 = vadd.f32 %v392_v28, %v4099_v30  ;;  %v784_v12 = vld [vmem:[%s5218_s5 + $0x360] sm:$0xff] }
  0xe8   :  { %5239 = vst [vmem:[#allocation22_spill] sm:$0xff] %v4351_v0  ;;  %v299_v57 = vmax.f32 %v192_v4, %v295_v20  ;;  %v503_v60 = vadd.f32 %v499_v16, %v4099_v30  ;;  %1368 = vperm.xlu0 %3655, %v782_v61   ;;  %v395_v17 = vadd.f32 %v391_v37, %v4101_v31  ;;  %v3447_v9 = vpop.f32.mrb[6].mxu0 }
  0xe9   :  { %v298_v45 = vmax.f32 %v191_v56, %v294_v8  ;;  %v502_v23 = vadd.f32 %v498_v13, %v4101_v31  ;;  %v3457_v21 = vpop.f32.mrb[6].mxu1  ;;  %v400_v36 = vmax.f32 %v396_v53, 0.0  ;;  %v394_v4 = vmul.f32 %v3447_v9, %v4089_v26  ;;  %v382_v61 = vpop.f32.mrb[7].mxu0 }
  0xea   :  { %v501_v30 = vmul.f32 %v3457_v21, %v4089_v26  ;;  %v489_v20 = vpop.f32.mrb[7].mxu1  ;;  %v399_v28 = vmax.f32 %v395_v17, 0.0  ;;  %v393_v56 = vmul.f32 %v382_v61, %v4079_v22  ;;  %v4367_v29 = vpop.permute.xlu1 %1063  ;;  %v507_v37 = vmax.f32 %v503_v60, 0.0  ;;  %v787_v26 = vld [vmem:[%s5218_s5 + $0x378] sm:$0xff] }
  0xeb   :  { %v500_v16 = vmul.f32 %v489_v20, %v4079_v22  ;;  %5240 = vst [vmem:[#allocation23_spill] sm:$0xff] %v4367_v29  ;;  %v4369_v31 = vpop.permute.xlu0 %1058  ;;  %1383 = vperm.xlu1 %3656, %v785_v27   ;;  %v404_v8 = vmax.f32 %v297_v52, %v400_v36  ;;  %v398_v13 = vadd.f32 %v394_v4, %v4109_v34  ;;  %v506_v9 = vmax.f32 %v502_v23, 0.0  ;;  %v786_v52 = vld [vmem:[%s5218_s5 + $0x370] sm:$0xff]  ;;  %v3736_v29 = vld [vmem:[%s5217_s4 + $0x278] sm:$0xff]  }
  0xec   :  { %5241 = vst [vmem:[#allocation24_spill] sm:$0xff] %v4369_v31  ;;  %v505_v53 = vadd.f32 %v501_v30, %v4109_v34  ;;  %1378 = vperm.xlu0 %3655, %v784_v12   ;;  %v403_v17 = vmax.f32 %v296_v5, %v399_v28  ;;  %v397_v22 = vadd.f32 %v393_v56, %v4111_v35  ;;  %v789_v28 = vld [vmem:[%s5218_s5 + $0x388] sm:$0xff]  ;;  %v788_v56 = vld [vmem:[%s5218_s5 + $0x380] sm:$0xff] }
  0xed   :  { %v504_v21 = vadd.f32 %v500_v16, %v4111_v35  ;;  %v511_v60 = vmax.f32 %v404_v8, %v507_v37  ;;  %v402_v27 = vmax.f32 %v398_v13, 0.0  ;;  %v790_v13 = vld [vmem:[%s5218_s5 + $0x390] sm:$0xff] }
  0xee   :  { %v510_v36 = vmax.f32 %v403_v17, %v506_v9  ;;  %v401_v4 = vmax.f32 %v397_v22, 0.0  ;;  %v4381_v34 = vpop.permute.xlu1 %1073  ;;  %v509_v5 = vmax.f32 %v505_v53, 0.0  ;;  %v3659_v53 = vld [vmem:[%s5217_s4 + $0x8] sm:$0xff]   ;;  %v3661_v17 = vld [vmem:[%s5217_s4 + $0x10] sm:$0xff]  }
  0xef   :  { %5242 = vst [vmem:[#allocation25_spill] sm:$0xff] %v4381_v34  ;;  %v4383_v12 = vpop.permute.xlu0 %1068  ;;  %1393 = vperm.xlu1 %3656, %v787_v26   ;;  %v406_v30 = vmax.f32 %v299_v57, %v402_v27  ;;  %v508_v20 = vmax.f32 %v504_v21, 0.0  ;;  %v3660_v26 = vld [vmem:[%s5217_s4 + $0x148] sm:$0xff]   ;;  %v3662_v9 = vld [vmem:[%s5217_s4 + $0x150] sm:$0xff]   ;;  %v792_v21 = vld [vmem:[%s5218_s5 + $0x3a0] sm:$0xff] }
  0xf0   :  { %5243 = vst [vmem:[#allocation26_spill] sm:$0xff] %v4383_v12  ;;  %1388 = vperm.xlu0 %3655, %v786_v52   ;;  %v674_v23 = vpack.c.bf16 %v511_v60, %v510_v36  ;;  %v405_v61 = vmax.f32 %v298_v45, %v401_v4  ;;  %v791_v45 = vld [vmem:[%s5218_s5 + $0x398] sm:$0xff]  ;;  %v793_v22 = vld [vmem:[%s5218_s5 + $0x3a8] sm:$0xff]  ;;  %v794_v36 = vld [vmem:[%s5218_s5 + $0x3b0] sm:$0xff] }
  0xf1   :  { %v513_v35 = vmax.f32 %v406_v30, %v509_v5  ;;  %v795_v27 = vld [vmem:[%s5218_s5 + $0x3b8] sm:$0xff]  ;;  %v3665_v5 = vld [vmem:[%s5217_s4 + $0x20] sm:$0xff]  }
  0xf2   :  { %v512_v16 = vmax.f32 %v405_v61, %v508_v20  ;;  %3458 = vmatprep.subr.bf16.mxu0 %v674_v23  ;;  %3646 = vmatprep.subr.bf16.mxu1 %v674_v23  ;;  %v4391_v8 = vpop.permute.xlu1 %1083  ;;  %v3663_v4 = vld [vmem:[%s5217_s4 + $0x18] sm:$0xff]  }
  0xf3   :  { %3459 = vmatpush3.bf16.msra.mxu0 %v674_v23  ;;  %3648 = vmatpush3.bf16.msra.mxu1 %v674_v23  ;;  %5244 = vst [vmem:[#allocation27_spill] sm:$0xff] %v4391_v8  ;;  %v4393_v37 = vpop.permute.xlu0 %1078  ;;  %v3664_v30 = vld [vmem:[%s5217_s4 + $0x158] sm:$0xff]   ;;  %v3666_v23 = vld [vmem:[%s5217_s4 + $0x160] sm:$0xff]  }
  0xf4   :  { %v675_v57 = vpack.c.bf16 %v513_v35, %v512_v16  ;;  %5245 = vst [vmem:[#allocation28_spill] sm:$0xff] %v4393_v37  ;;  %1403 = vperm.xlu1 %3656, %v789_v28   ;;  %1398 = vperm.xlu0 %3655, %v788_v56   ;;  %v797_v35 = vld [vmem:[%s5218_s5 + $0x3c8] sm:$0xff]  ;;  %v796_v28 = vld [vmem:[%s5218_s5 + $0x3c0] sm:$0xff]  ;;  %v799_v56 = vld [vmem:[%s5218_s5 + $0x3d8] sm:$0xff] }
  0xf5   :  { %v798_v16 = vld [vmem:[%s5218_s5 + $0x3d0] sm:$0xff]  ;;  %v3728_v8 = vld [vmem:[%s5217_s4 + $0x258] sm:$0xff]   ;;  %v3732_v37 = vld [vmem:[%s5217_s4 + $0x268] sm:$0xff]  }
  0xf6   :  { %3460 = vmatprep.subr.bf16.mxu0 %v675_v57  ;;  %3647 = vmatprep.subr.bf16.mxu1 %v675_v57  ;;  %v4419_v52 = vpop.permute.xlu1 %1093 }
  0xf7   :  { %3461 = vmatpush3.bf16.msra.mxu0 %v675_v57  ;;  %3649 = vmatpush3.bf16.msra.mxu1 %v675_v57  ;;  %5246 = vst [vmem:[#allocation29_spill] sm:$0xff] %v4419_v52  ;;  %v4421_v60 = vpop.permute.xlu0 %1088  ;;  %v3731_v52 = vld [vmem:[%s5217_s4 + $0x128] sm:$0xff]  }
  0xf8   :  { %1413 = vperm.xlu1 %3656, %v791_v45   ;;  %1408 = vperm.xlu0 %3655, %v790_v13   ;;  %5247 = vst [vmem:[#allocation30_spill] sm:$0xff] %v4421_v60  ;;  %v3667_v13 = vld [vmem:[%s5217_s4 + $0x28] sm:$0xff]   ;;  %v3735_v60 = vld [vmem:[%s5217_s4 + $0x138] sm:$0xff]  }
  0xfa   :  { %3463 = vmatmul.mubr.msk.bf16.vlgmr.msra.gmra.mrb[8].mxu0 %vm2036_vm4, %v3659_v53  ;;  %3543 = vmatmul.mubr.msk.bf16.vlgmr.msra.gmra.mrb[8].mxu1 %vm2036_vm4, %v3660_v26  ;;  %v4445_v61 = vpop.permute.xlu1 %1103  ;;  %v3668_v53 = vld [vmem:[%s5217_s4 + $0x168] sm:$0xff]   ;;  %v3669_v26 = vld [vmem:[%s5217_s4 + $0x30] sm:$0xff]  }
  0xfb   :  { %3466 = vmatprep.mubr.msk.bf16.mxu0 %vm2036_vm4, %v3661_v17  ;;  %3546 = vmatprep.mubr.msk.bf16.mxu1 %vm2036_vm4, %v3662_v9  ;;  %5248 = vst [vmem:[#allocation31_spill] sm:$0xff] %v4445_v61  ;;  %v4447_v20 = vpop.permute.xlu0 %1098  ;;  %v3670_v17 = vld [vmem:[%s5217_s4 + $0x170] sm:$0xff]   ;;  %v801_v9 = vld [vmem:[%s5218_s5 + $0x3e8] sm:$0xff] }
  0xfc   :  { %1423 = vperm.xlu1 %3656, %v793_v22   ;;  %1418 = vperm.xlu0 %3655, %v792_v21   ;;  %5249 = vst [vmem:[#allocation32_spill] sm:$0xff] %v4447_v20  ;;  %v800_v22 = vld [vmem:[%s5218_s5 + $0x3e0] sm:$0xff]  ;;  %v3724_v61 = vld [vmem:[%s5217_s4 + $0x248] sm:$0xff]  }
  0xfe   :  { %v4465_v57 = vpop.permute.xlu1 %1113 }
  0xff   :  { %5250 = vst [vmem:[#allocation33_spill] sm:$0xff] %v4465_v57  ;;  %v4467_v45 = vpop.permute.xlu0 %1108  ;;  %v3725_v57 = vld [vmem:[%s5217_s4 + $0x110] sm:$0xff]  }
 0x100   :  { %1433 = vperm.xlu1 %3656, %v795_v27   ;;  %1428 = vperm.xlu0 %3655, %v794_v36   ;;  %5251 = vst [vmem:[#allocation34_spill] sm:$0xff] %v4467_v45  ;;  %v803_v36 = vld [vmem:[%s5218_s5 + $0x3f8] sm:$0xff] }
 0x101   :  { %v3727_v45 = vld [vmem:[%s5217_s4 + $0x118] sm:$0xff]  }
 0x102   :  { %3467 = vmatmul.mubr.msk.bf16.gmra.mrb[12].mxu0 %vm2036_vm4, %v3663_v4  ;;  %3547 = vmatmul.mubr.msk.bf16.gmra.mrb[12].mxu1 %vm2036_vm4, %v3664_v30  ;;  %v4491_v21 = vpop.permute.xlu1 %1123  ;;  %v802_v4 = vld [vmem:[%s5218_s5 + $0x3f0] sm:$0xff]  ;;  %v3671_v30 = vld [vmem:[%s5217_s4 + $0x38] sm:$0xff]  }
 0x103   :  { %3470 = vmatprep.mubr.msk.bf16.mxu0 %vm2036_vm4, %v3665_v5  ;;  %3550 = vmatprep.mubr.msk.bf16.mxu1 %vm2036_vm4, %v3666_v23  ;;  %5252 = vst [vmem:[#allocation35_spill] sm:$0xff] %v4491_v21  ;;  %v4493_v27 = vpop.permute.xlu0 %1118  ;;  %v3672_v5 = vld [vmem:[%s5217_s4 + $0x178] sm:$0xff]   ;;  %v3673_v23 = vld [vmem:[%s5217_s4 + $0x40] sm:$0xff]   ;;  %v3716_v21 = vld [vmem:[%s5217_s4 + $0x228] sm:$0xff]  }
 0x104   :  { %1443 = vperm.xlu1 %3656, %v797_v35   ;;  %1438 = vperm.xlu0 %3655, %v796_v28   ;;  %5253 = vst [vmem:[#allocation36_spill] sm:$0xff] %v4493_v27  ;;  %v3674_v35 = vld [vmem:[%s5217_s4 + $0x180] sm:$0xff]   ;;  %v805_v28 = vld [vmem:[%s5218_s5 + $0x408] sm:$0xff]  ;;  %v3720_v27 = vld [vmem:[%s5217_s4 + $0x238] sm:$0xff]  }
 0x108   :  { %1453 = vperm.xlu1 %3656, %v799_v56   ;;  %1448 = vperm.xlu0 %3655, %v798_v16   ;;  %v804_v56 = vld [vmem:[%s5218_s5 + $0x400] sm:$0xff]  ;;  %v4519_v16 = vpop.permute.xlu1 %1133 }
 0x109   :  { %5254 = vst [vmem:[#allocation37_spill] sm:$0xff] %v4519_v16  ;;  %v3719_v16 = vld [vmem:[%s5217_s4 + $0xf8] sm:$0xff]  }
 0x10a   :  { %3471 = vmatmul.mubr.msk.bf16.gmra.mrb[16].mxu0 %vm2036_vm4, %v3667_v13  ;;  %3551 = vmatmul.mubr.msk.bf16.gmra.mrb[16].mxu1 %vm2036_vm4, %v3668_v53  ;;  %v4521_v13 = vpop.permute.xlu0 %1128  ;;  %v807_v53 = vld [vmem:[%s5218_s5 + $0x418] sm:$0xff] }
 0x10b   :  { %3474 = vmatprep.mubr.msk.bf16.mxu0 %vm2036_vm4, %v3669_v26  ;;  %3554 = vmatprep.mubr.msk.bf16.mxu1 %vm2036_vm4, %v3670_v17  ;;  %5255 = vst [vmem:[#allocation38_spill] sm:$0xff] %v4521_v13  ;;  %v806_v26 = vld [vmem:[%s5218_s5 + $0x410] sm:$0xff]  ;;  %v3675_v17 = vld [vmem:[%s5217_s4 + $0x48] sm:$0xff]  }
 0x10c   :  { %1463 = vperm.xlu1 %3656, %v801_v9   ;;  %1458 = vperm.xlu0 %3655, %v800_v22   ;;  %v3676_v9 = vld [vmem:[%s5217_s4 + $0x188] sm:$0xff]   ;;  %v3677_v22 = vld [vmem:[%s5217_s4 + $0x50] sm:$0xff]  }
 0x10d   :  { %v3723_v13 = vld [vmem:[%s5217_s4 + $0x108] sm:$0xff]  }
 0x110   :  { %1473 = vperm.xlu1 %3656, %v803_v36   ;;  %1468 = vperm.xlu0 %3655, %v802_v4   ;;  %v3678_v36 = vld [vmem:[%s5217_s4 + $0x190] sm:$0xff]   ;;  %v4545_v4 = vpop.permute.xlu1 %1143 }
 0x111   :  { %5256 = vst [vmem:[#allocation39_spill] sm:$0xff] %v4545_v4 }
 0x112   :  { %3475 = vmatmul.mubr.msk.bf16.gmra.mrb[20].mxu0 %vm2036_vm4, %v3671_v30  ;;  %3555 = vmatmul.mubr.msk.bf16.gmra.mrb[20].mxu1 %vm2036_vm4, %v3672_v5  ;;  %v4547_v30 = vpop.permute.xlu0 %1138  ;;  %v809_v5 = vld [vmem:[%s5218_s5 + $0x428] sm:$0xff] }
 0x113   :  { %3478 = vmatprep.mubr.msk.bf16.mxu0 %vm2036_vm4, %v3673_v23  ;;  %3558 = vmatprep.mubr.msk.bf16.mxu1 %vm2036_vm4, %v3674_v35  ;;  %5257 = vst [vmem:[#allocation40_spill] sm:$0xff] %v4547_v30  ;;  %v808_v23 = vld [vmem:[%s5218_s5 + $0x420] sm:$0xff]  ;;  %v811_v35 = vld [vmem:[%s5218_s5 + $0x438] sm:$0xff] }
 0x114   :  { %1483 = vperm.xlu1 %3656, %v805_v28   ;;  %1478 = vperm.xlu0 %3655, %v804_v56   ;;  %v810_v28 = vld [vmem:[%s5218_s5 + $0x430] sm:$0xff]  ;;  %v4565_v56 = vpop.permute.xlu1 %1153 }
 0x115   :  { %5258 = vst [vmem:[#allocation41_spill] sm:$0xff] %v4565_v56  ;;  %v3713_v56 = vld [vmem:[%s5217_s4 + $0xe0] sm:$0xff]  }
 0x118   :  { %1493 = vperm.xlu1 %3656, %v807_v53   ;;  %1488 = vperm.xlu0 %3655, %v806_v26   ;;  %v4567_v53 = vpop.permute.xlu0 %1148  ;;  %v3679_v26 = vld [vmem:[%s5217_s4 + $0x58] sm:$0xff]  }
 0x119   :  { %5259 = vst [vmem:[#allocation42_spill] sm:$0xff] %v4567_v53  ;;  %v3715_v53 = vld [vmem:[%s5217_s4 + $0xe8] sm:$0xff]  }
 0x11a   :  { %3479 = vmatmul.mubr.msk.bf16.gmra.mrb[24].mxu0 %vm2036_vm4, %v3675_v17  ;;  %3559 = vmatmul.mubr.msk.bf16.gmra.mrb[24].mxu1 %vm2036_vm4, %v3676_v9  ;;  %v3680_v17 = vld [vmem:[%s5217_s4 + $0x198] sm:$0xff]   ;;  %v3681_v9 = vld [vmem:[%s5217_s4 + $0x60] sm:$0xff]  }
 0x11b   :  { %3482 = vmatprep.mubr.msk.bf16.mxu0 %vm2036_vm4, %v3677_v22  ;;  %3562 = vmatprep.mubr.msk.bf16.mxu1 %vm2036_vm4, %v3678_v36  ;;  %v3682_v22 = vld [vmem:[%s5217_s4 + $0x1a0] sm:$0xff]   ;;  %v813_v36 = vld [vmem:[%s5218_s5 + $0x448] sm:$0xff] }
 0x11c   :  { %1503 = vperm.xlu1 %3656, %v809_v5   ;;  %1498 = vperm.xlu0 %3655, %v808_v23   ;;  %v812_v5 = vld [vmem:[%s5218_s5 + $0x440] sm:$0xff]  ;;  %v4591_v23 = vpop.permute.xlu1 %1163 }
 0x11d   :  { %5260 = vst [vmem:[#allocation43_spill] sm:$0xff] %v4591_v23  ;;  %v816_v23 = vld [vmem:[%s5218_s5 + $0x460] sm:$0xff] }
 0x120   :  { %1513 = vperm.xlu1 %3656, %v811_v35   ;;  %1508 = vperm.xlu0 %3655, %v810_v28   ;;  %v4593_v35 = vpop.permute.xlu0 %1158  ;;  %v815_v28 = vld [vmem:[%s5218_s5 + $0x458] sm:$0xff] }
 0x121   :  { %5261 = vst [vmem:[#allocation44_spill] sm:$0xff] %v4593_v35  ;;  %v4619_v35 = vpop.permute.xlu1 %1173 }
 0x122   :  { %3483 = vmatmul.mubr.msk.bf16.gmra.mrb[28].mxu0 %vm2036_vm4, %v3679_v26  ;;  %3563 = vmatmul.mubr.msk.bf16.gmra.mrb[28].mxu1 %vm2036_vm4, %v3680_v17  ;;  %v814_v26 = vld [vmem:[%s5218_s5 + $0x450] sm:$0xff]  ;;  %v3683_v17 = vld [vmem:[%s5217_s4 + $0x68] sm:$0xff]   ;;  %5262 = vst [vmem:[#allocation45_spill] sm:$0xff] %v4619_v35 }
 0x123   :  { %3486 = vmatprep.mubr.msk.bf16.mxu0 %vm2036_vm4, %v3681_v9  ;;  %3566 = vmatprep.mubr.msk.bf16.mxu1 %vm2036_vm4, %v3682_v22  ;;  %v3684_v9 = vld [vmem:[%s5217_s4 + $0x1a8] sm:$0xff]   ;;  %v3685_v22 = vld [vmem:[%s5217_s4 + $0x70] sm:$0xff]  }
 0x124   :  { %1523 = vperm.xlu1 %3656, %v813_v36   ;;  %1518 = vperm.xlu0 %3655, %v812_v5   ;;  %v3686_v36 = vld [vmem:[%s5217_s4 + $0x1b0] sm:$0xff]   ;;  %v817_v5 = vld [vmem:[%s5218_s5 + $0x468] sm:$0xff]  ;;  %v4621_v4 = vpop.permute.xlu0 %1168 }
 0x125   :  { %5263 = vst [vmem:[#allocation46_spill] sm:$0xff] %v4621_v4  ;;  %v821_v35 = vld [vmem:[%s5218_s5 + $0x488] sm:$0xff]  ;;  %v820_v4 = vld [vmem:[%s5218_s5 + $0x480] sm:$0xff] }
 0x128   :  { %1533 = vperm.xlu1 %3656, %v815_v28   ;;  %1528 = vperm.xlu0 %3655, %v814_v26   ;;  %v819_v28 = vld [vmem:[%s5218_s5 + $0x478] sm:$0xff]  ;;  %v818_v26 = vld [vmem:[%s5218_s5 + $0x470] sm:$0xff] }
 0x12a   :  { %3487 = vmatmul.mubr.msk.bf16.gmra.mrb[32].mxu0 %vm2036_vm4, %v3683_v17  ;;  %3567 = vmatmul.mubr.msk.bf16.gmra.mrb[32].mxu1 %vm2036_vm4, %v3684_v9  ;;  %v3687_v17 = vld [vmem:[%s5217_s4 + $0x78] sm:$0xff]  }
 0x12b   :  { %3490 = vmatprep.mubr.msk.bf16.mxu0 %vm2036_vm4, %v3685_v22  ;;  %3570 = vmatprep.mubr.msk.bf16.mxu1 %vm2036_vm4, %v3686_v36  ;;  %v3688_v9 = vld [vmem:[%s5217_s4 + $0x1b8] sm:$0xff]   ;;  %v3690_v22 = vld [vmem:[%s5217_s4 + $0x1c0] sm:$0xff]   ;;  %v4645_v36 = vpop.permute.xlu1 %1183 }
 0x12c   :  { %1543 = vperm.xlu1 %3656, %v817_v5   ;;  %1538 = vperm.xlu0 %3655, %v816_v23   ;;  %v3689_v23 = vld [vmem:[%s5217_s4 + $0x80] sm:$0xff]   ;;  %5264 = vst [vmem:[#allocation47_spill] sm:$0xff] %v4645_v36  ;;  %v4647_v5 = vpop.permute.xlu0 %1178 }
 0x12d   :  { %5265 = vst [vmem:[#allocation48_spill] sm:$0xff] %v4647_v5 }
 0x12f   :  { %v4665_v36 = vpop.permute.xlu1 %1193 }
 0x130   :  { %1553 = vperm.xlu1 %3656, %v819_v28   ;;  %1548 = vperm.xlu0 %3655, %v818_v26   ;;  %v823_v28 = vld [vmem:[%s5218_s5 + $0x498] sm:$0xff]  ;;  %v822_v26 = vld [vmem:[%s5218_s5 + $0x490] sm:$0xff]  ;;  %5266 = vst [vmem:[#allocation49_spill] sm:$0xff] %v4665_v36  ;;  %v4667_v5 = vpop.permute.xlu0 %1188 }
 0x131   :  { %5267 = vst [vmem:[#allocation50_spill] sm:$0xff] %v4667_v5 }
 0x132   :  { %3491 = vmatmul.mubr.msk.bf16.gmra.mrb[36].mxu0 %vm2036_vm4, %v3687_v17  ;;  %3571 = vmatmul.mubr.msk.bf16.gmra.mrb[36].mxu1 %vm2036_vm4, %v3688_v9  ;;  %v3691_v17 = vld [vmem:[%s5217_s4 + $0x88] sm:$0xff]   ;;  %v3694_v9 = vld [vmem:[%s5217_s4 + $0x1d0] sm:$0xff]  }
 0x133   :  { %3494 = vmatprep.mubr.msk.bf16.mxu0 %vm2036_vm4, %v3689_v23  ;;  %3574 = vmatprep.mubr.msk.bf16.mxu1 %vm2036_vm4, %v3690_v22  ;;  %v825_v23 = vld [vmem:[%s5218_s5 + $0x4a8] sm:$0xff]  ;;  %v824_v22 = vld [vmem:[%s5218_s5 + $0x4a0] sm:$0xff]  ;;  %v4691_v36 = vpop.permute.xlu1 %1203 }
 0x134   :  { %1563 = vperm.xlu1 %3656, %v821_v35   ;;  %1558 = vperm.xlu0 %3655, %v820_v4   ;;  %v3692_v4 = vld [vmem:[%s5217_s4 + $0x1c8] sm:$0xff]   ;;  %v3693_v35 = vld [vmem:[%s5217_s4 + $0x90] sm:$0xff]   ;;  %5268 = vst [vmem:[#allocation51_spill] sm:$0xff] %v4691_v36  ;;  %v828_v36 = vld [vmem:[%s5218_s5 + $0x4c0] sm:$0xff] }
 0x138   :  { %1573 = vperm.xlu1 %3656, %v823_v28   ;;  %1568 = vperm.xlu0 %3655, %v822_v26   ;;  %v4693_v28 = vpop.permute.xlu0 %1198  ;;  %v827_v26 = vld [vmem:[%s5218_s5 + $0x4b8] sm:$0xff] }
 0x139   :  { %5269 = vst [vmem:[#allocation52_spill] sm:$0xff] %v4693_v28  ;;  %v4719_v28 = vpop.permute.xlu1 %1213 }
 0x13a   :  { %3495 = vmatmul.mubr.msk.bf16.gmra.mrb[40].mxu0 %vm2036_vm4, %v3691_v17  ;;  %3575 = vmatmul.mubr.msk.bf16.gmra.mrb[40].mxu1 %vm2036_vm4, %v3692_v4  ;;  %v826_v17 = vld [vmem:[%s5218_s5 + $0x4b0] sm:$0xff]  ;;  %v3695_v4 = vld [vmem:[%s5217_s4 + $0x98] sm:$0xff]   ;;  %5270 = vst [vmem:[#allocation53_spill] sm:$0xff] %v4719_v28  ;;  %v833_v28 = vld [vmem:[%s5218_s5 + $0x4e8] sm:$0xff] }
 0x13b   :  { %3498 = vmatprep.mubr.msk.bf16.mxu0 %vm2036_vm4, %v3693_v35  ;;  %3578 = vmatprep.mubr.msk.bf16.mxu1 %vm2036_vm4, %v3694_v9  ;;  %v3696_v35 = vld [vmem:[%s5217_s4 + $0x1d8] sm:$0xff]   ;;  %v3697_v9 = vld [vmem:[%s5217_s4 + $0xa0] sm:$0xff]  }
 0x13c   :  { %1583 = vperm.xlu1 %3656, %v825_v23   ;;  %1578 = vperm.xlu0 %3655, %v824_v22   ;;  %v3698_v23 = vld [vmem:[%s5217_s4 + $0x1e0] sm:$0xff]   ;;  %v829_v22 = vld [vmem:[%s5218_s5 + $0x4c8] sm:$0xff]  ;;  %v4721_v5 = vpop.permute.xlu0 %1208 }
 0x13d   :  { %5271 = vst [vmem:[#allocation54_spill] sm:$0xff] %v4721_v5  ;;  %v832_v5 = vld [vmem:[%s5218_s5 + $0x4e0] sm:$0xff] }
 0x140   :  { %1593 = vperm.xlu1 %3656, %v827_v26   ;;  %1588 = vperm.xlu0 %3655, %v826_v17   ;;  %v831_v26 = vld [vmem:[%s5218_s5 + $0x4d8] sm:$0xff]  ;;  %v830_v17 = vld [vmem:[%s5218_s5 + $0x4d0] sm:$0xff] }
 0x142   :  { %3499 = vmatmul.mubr.msk.bf16.gmra.mrb[44].mxu0 %vm2036_vm4, %v3695_v4  ;;  %3579 = vmatmul.mubr.msk.bf16.gmra.mrb[44].mxu1 %vm2036_vm4, %v3696_v35  ;;  %v3699_v4 = vld [vmem:[%s5217_s4 + $0xa8] sm:$0xff]  }
 0x143   :  { %3502 = vmatprep.mubr.msk.bf16.mxu0 %vm2036_vm4, %v3697_v9  ;;  %3582 = vmatprep.mubr.msk.bf16.mxu1 %vm2036_vm4, %v3698_v23  ;;  %v3700_v35 = vld [vmem:[%s5217_s4 + $0x1e8] sm:$0xff]   ;;  %v3702_v9 = vld [vmem:[%s5217_s4 + $0x1f0] sm:$0xff]   ;;  %v4745_v23 = vpop.permute.xlu1 %1223 }
 0x144   :  { %1603 = vperm.xlu1 %3656, %v829_v22   ;;  %1598 = vperm.xlu0 %3655, %v828_v36   ;;  %v3701_v36 = vld [vmem:[%s5217_s4 + $0xb0] sm:$0xff]   ;;  %5272 = vst [vmem:[#allocation55_spill] sm:$0xff] %v4745_v23  ;;  %v4747_v22 = vpop.permute.xlu0 %1218 }
 0x145   :  { %5273 = vst [vmem:[#allocation56_spill] sm:$0xff] %v4747_v22 }
 0x147   :  { %v4765_v23 = vpop.permute.xlu1 %1233 }
 0x148   :  { %1613 = vperm.xlu1 %3656, %v831_v26   ;;  %1608 = vperm.xlu0 %3655, %v830_v17   ;;  %v835_v26 = vld [vmem:[%s5218_s5 + $0x4f8] sm:$0xff]  ;;  %v834_v17 = vld [vmem:[%s5218_s5 + $0x4f0] sm:$0xff]  ;;  %5274 = vst [vmem:[#allocation57_spill] sm:$0xff] %v4765_v23  ;;  %v4767_v22 = vpop.permute.xlu0 %1228  ;;  %v3707_v23 = vld [vmem:[%s5217_s4 + $0xc8] sm:$0xff]  }
 0x149   :  { %5275 = vst [vmem:[#allocation58_spill] sm:$0xff] %v4767_v22  ;;  %v3712_v22 = vld [vmem:[%s5217_s4 + $0x218] sm:$0xff]  }
 0x14a   :  { %3503 = vmatmul.mubr.msk.bf16.gmra.mrb[48].mxu0 %vm2036_vm4, %v3699_v4  ;;  %3583 = vmatmul.mubr.msk.bf16.gmra.mrb[48].mxu1 %vm2036_vm4, %v3700_v35  ;;  %v3703_v4 = vld [vmem:[%s5217_s4 + $0xb8] sm:$0xff]   ;;  %v3706_v35 = vld [vmem:[%s5217_s4 + $0x200] sm:$0xff]  }
 0x14b   :  { %3506 = vmatprep.mubr.msk.bf16.mxu0 %vm2036_vm4, %v3701_v36  ;;  %3586 = vmatprep.mubr.msk.bf16.mxu1 %vm2036_vm4, %v3702_v9  ;;  %v4785_v36 = vpop.permute.xlu1 %1243 }
 0x14c   :  { %1623 = vperm.xlu1 %3656, %v833_v28   ;;  %1618 = vperm.xlu0 %3655, %v832_v5   ;;  %v3704_v5 = vld [vmem:[%s5217_s4 + $0x1f8] sm:$0xff]   ;;  %v3705_v28 = vld [vmem:[%s5217_s4 + $0xc0] sm:$0xff]   ;;  %v4787_v9 = vpop.permute.xlu0 %1238 }
 0x150   :  { %1633 = vperm.xlu1 %3656, %v835_v26   ;;  %1628 = vperm.xlu0 %3655, %v834_v17   ;;  %v3708_v26 = vld [vmem:[%s5217_s4 + $0x208] sm:$0xff]   ;;  %v3709_v17 = vld [vmem:[%s5217_s4 + $0xd0] sm:$0xff]  }
 0x152   :  { %3507 = vmatmul.mubr.msk.bf16.gmra.mrb[52].mxu0 %vm2036_vm4, %v3703_v4  ;;  %3587 = vmatmul.mubr.msk.bf16.gmra.mrb[52].mxu1 %vm2036_vm4, %v3704_v5  ;;  %v3710_v4 = vld [vmem:[%s5217_s4 + $0x210] sm:$0xff]   ;;  %v4801_v5 = vpop.permute.xlu1 %1253 }
 0x153   :  { %3510 = vmatprep.mubr.msk.bf16.mxu0 %vm2036_vm4, %v3705_v28  ;;  %3590 = vmatprep.mubr.msk.bf16.mxu1 %vm2036_vm4, %v3706_v35  ;;  %v4803_v28 = vpop.permute.xlu0 %1248  ;;  %v3711_v35 = vld [vmem:[%s5217_s4 + $0xd8] sm:$0xff]  }
 0x15a   :  { %3511 = vmatmul.mubr.msk.bf16.gmra.mrb[56].mxu0 %vm2036_vm4, %v3707_v23  ;;  %3591 = vmatmul.mubr.msk.bf16.gmra.mrb[56].mxu1 %vm2036_vm4, %v3708_v26  ;;  %v3714_v23 = vld [vmem:[%s5217_s4 + $0x220] sm:$0xff]   ;;  %v4821_v26 = vpop.permute.xlu1 %1263 }
 0x15b   :  { %3514 = vmatprep.mubr.msk.bf16.mxu0 %vm2036_vm4, %v3709_v17  ;;  %3594 = vmatprep.mubr.msk.bf16.mxu1 %vm2036_vm4, %v3710_v4  ;;  %v4823_v17 = vpop.permute.xlu0 %1258 }
 0x15e   :  { %v4829_v4 = vpop.permute.xlu1 %1273 }
 0x15f   :  { %v4831_v30 = vpop.permute.xlu0 %1268 }
 0x162   :  { %3515 = vmatmul.mubr.msk.bf16.gmra.mrb[60].mxu0 %vm2036_vm4, %v3711_v35  ;;  %3595 = vmatmul.mubr.msk.bf16.gmra.mrb[60].mxu1 %vm2036_vm4, %v3712_v22  ;;  %v3717_v22 = vld [vmem:[%s5217_s4 + $0xf0] sm:$0xff]   ;;  %v4849_v35 = vpop.permute.xlu1 %1283 }
 0x163   :  { %3518 = vmatprep.mubr.msk.bf16.mxu0 %vm2036_vm4, %v3713_v56  ;;  %3598 = vmatprep.mubr.msk.bf16.mxu1 %vm2036_vm4, %v3714_v23  ;;  %v3718_v56 = vld [vmem:[%s5217_s4 + $0x230] sm:$0xff]   ;;  %v4851_v23 = vpop.permute.xlu0 %1278 }
 0x16a   :  { %3519 = vmatmul.mubr.msk.bf16.gmra.mrb[64].mxu0 %vm2036_vm4, %v3715_v53  ;;  %3599 = vmatmul.mubr.msk.bf16.gmra.mrb[64].mxu1 %vm2036_vm4, %v3716_v21  ;;  %v3721_v21 = vld [vmem:[%s5217_s4 + $0x100] sm:$0xff]  }
 0x16b   :  { %3522 = vmatprep.mubr.msk.bf16.mxu0 %vm2036_vm4, %v3717_v22  ;;  %3602 = vmatprep.mubr.msk.bf16.mxu1 %vm2036_vm4, %v3718_v56  ;;  %v3722_v53 = vld [vmem:[%s5217_s4 + $0x240] sm:$0xff]   ;;  %v4865_v22 = vpop.permute.xlu1 %1293  ;;  %v4867_v56 = vpop.permute.xlu0 %1288 }
 0x172   :  { %3523 = vmatmul.mubr.msk.bf16.gmra.mrb[68].mxu0 %vm2036_vm4, %v3719_v16  ;;  %3603 = vmatmul.mubr.msk.bf16.gmra.mrb[68].mxu1 %vm2036_vm4, %v3720_v27  ;;  %v3726_v27 = vld [vmem:[%s5217_s4 + $0x250] sm:$0xff]   ;;  %v4885_v16 = vpop.permute.xlu1 %1303 }
 0x173   :  { %3526 = vmatprep.mubr.msk.bf16.mxu0 %vm2036_vm4, %v3721_v21  ;;  %3606 = vmatprep.mubr.msk.bf16.mxu1 %vm2036_vm4, %v3722_v53  ;;  %v4887_v21 = vpop.permute.xlu0 %1298 }
 0x176   :  { %v4893_v53 = vpop.permute.xlu1 %1313 }
 0x177   :  { %v4895_v20 = vpop.permute.xlu0 %1308 }
 0x17a   :  { %3527 = vmatmul.mubr.msk.bf16.gmra.mrb[72].mxu0 %vm2036_vm4, %v3723_v13  ;;  %3607 = vmatmul.mubr.msk.bf16.gmra.mrb[72].mxu1 %vm2036_vm4, %v3724_v61  ;;  %v3729_v61 = vld [vmem:[%s5217_s4 + $0x120] sm:$0xff]   ;;  %v4913_v13 = vpop.permute.xlu1 %1323 }
 0x17b   :  { %3530 = vmatprep.mubr.msk.bf16.mxu0 %vm2036_vm4, %v3725_v57  ;;  %3610 = vmatprep.mubr.msk.bf16.mxu1 %vm2036_vm4, %v3726_v27  ;;  %v3730_v57 = vld [vmem:[%s5217_s4 + $0x260] sm:$0xff]   ;;  %v4915_v27 = vpop.permute.xlu0 %1318 }
 0x182   :  { %3531 = vmatmul.mubr.msk.bf16.gmra.mrb[76].mxu0 %vm2036_vm4, %v3727_v45  ;;  %3611 = vmatmul.mubr.msk.bf16.gmra.mrb[76].mxu1 %vm2036_vm4, %v3728_v8  ;;  %v3733_v8 = vld [vmem:[%s5217_s4 + $0x130] sm:$0xff]  }
 0x183   :  { %3534 = vmatprep.mubr.msk.bf16.mxu0 %vm2036_vm4, %v3729_v61  ;;  %3614 = vmatprep.mubr.msk.bf16.mxu1 %vm2036_vm4, %v3730_v57  ;;  %v3734_v45 = vld [vmem:[%s5217_s4 + $0x270] sm:$0xff]   ;;  %v4929_v61 = vpop.permute.xlu1 %1333  ;;  %v4931_v57 = vpop.permute.xlu0 %1328  ;;  %s3763_s4 = smov [#allocation2]  }
 0x184   :  { %s3115_s11 = sshll.u32 %s3763_s4, 4  ;;  %s3116_s11 = int_to_ptr.vmem [resolvable:$true] %s3115_s11 }
 0x185   :  { %s3737_s12 = scalar_lea.vmem %s3116_s11, 20480  ;;  %p3742_p1 = scmp.lt.s32.totalorder %s3116_s11, %s3116_s11 }
 0x186   :  { %p3738_p0 = scmp.ne.s32.totalorder %s3116_s11, %s3737_s12  ;;  %p3743_p2 = scmp.lt.s32.totalorder %s3737_s12, %s3737_s12 }
 0x187   :  { %v4943_v34 = vpop.permute.xlu1 %1343  ;;  %v4945_v31 = vpop.permute.xlu0 %1338 }
 0x188   :  { %p3744_p3 = por %p3743_p2, %p3742_p1 }
 0x18a   :  { %3535 = vmatmul.mubr.msk.bf16.gmra.mrb[80].mxu0 %vm2036_vm4, %v3731_v52  ;;  %3615 = vmatmul.mubr.msk.bf16.gmra.mrb[80].mxu1 %vm2036_vm4, %v3732_v37  ;;  %p3745_p4 = pnand %p3744_p3, %p3738_p0 }
 0x18b   :  { %3538 = vmatprep.mubr.msk.bf16.mxu0 %vm2036_vm4, %v3733_v8  ;;  %3618 = vmatprep.mubr.msk.bf16.mxu1 %vm2036_vm4, %v3734_v45  ;;  %v4949_v37 = vpop.permute.xlu1 %1353  ;;  %v4951_v52 = vpop.permute.xlu0 %1348 }
 0x18f   :  { %v4953_v8 = vpop.permute.xlu1 %1363  ;;  %v4955_v45 = vpop.permute.xlu0 %1358 }
 0x190   :  { %5276 = vst [vmem:[#allocation59_spill] sm:$0xff] %v4953_v8  ;;  %5277 = vst [vmem:[#allocation60_spill] sm:$0xff] %v4955_v45 }
 0x192   :  { %3539 = vmatmul.mubr.msk.bf16.gmra.mrb[84].mxu0 %vm2036_vm4, %v3735_v60  ;;  %3619 = vmatmul.mubr.msk.bf16.gmra.mrb[84].mxu1 %vm2036_vm4, %v3736_v29 }
 0x193   :  { %v4957_v12 = vpop.permute.xlu1 %1373  ;;  %v4959_v44 = vpop.permute.xlu0 %1368 }
 0x194   :  { %5278 = vst [vmem:[#allocation61_spill] sm:$0xff] %v4957_v12 }
 0x197   :  { %v4961_v0 = vpop.permute.xlu1 %1383  ;;  %v4963_v1 = vpop.permute.xlu0 %1378 }
 0x198   :  { %5279 = vst [vmem:[#allocation62_spill] sm:$0xff] %v4961_v0  ;;  %5280 = vst [vmem:[#allocation63_spill] sm:$0xff] %v4963_v1 }
 0x19b   :  { %v4965_v40 = vpop.permute.xlu1 %1393  ;;  %v4967_v60 = vpop.permute.xlu0 %1388 }
 0x19c   :  { %5281 = vst [vmem:[#allocation64_spill] sm:$0xff] %v4965_v40  ;;  %5282 = vst [vmem:[#allocation65_spill] sm:$0xff] %v4967_v60 }
 0x19f   :  { %v4969_v29 = vpop.permute.xlu1 %1403  ;;  %v4971_v48 = vpop.permute.xlu0 %1398 }
 0x1a0   :  { %5283 = vst [vmem:[#allocation66_spill] sm:$0xff] %v4969_v29  ;;  %5284 = vst [vmem:[#allocation67_spill] sm:$0xff] %v4971_v48 }
 0x1a3   :  { %v4973_v41 = vpop.permute.xlu1 %1413  ;;  %v4975_v49 = vpop.permute.xlu0 %1408 }
 0x1a4   :  { %5285 = vst [vmem:[#allocation68_spill] sm:$0xff] %v4973_v41  ;;  %5286 = vst [vmem:[#allocation69_spill] sm:$0xff] %v4975_v49 }
 0x1a7   :  { %v4977_v8 = vpop.permute.xlu1 %1423  ;;  %v4979_v24 = vpop.permute.xlu0 %1418 }
 0x1a8   :  { %5287 = vst [vmem:[#allocation70_spill] sm:$0xff] %v4977_v8  ;;  %5288 = vst [vmem:[#allocation71_spill] sm:$0xff] %v4979_v24 }
 0x1ab   :  { %v4981_v12 = vpop.permute.xlu1 %1433  ;;  %v4983_v0 = vpop.permute.xlu0 %1428 }
 0x1ac   :  { %5289 = vst [vmem:[#allocation72_spill] sm:$0xff] %v4981_v12  ;;  %5290 = vst [vmem:[#allocation73_spill] sm:$0xff] %v4983_v0 }
 0x1af   :  { %v4985_v1 = vpop.permute.xlu1 %1443  ;;  %v4987_v40 = vpop.permute.xlu0 %1438 }
 0x1b0   :  { %5291 = vst [vmem:[#allocation74_spill] sm:$0xff] %v4985_v1  ;;  %5292 = vst [vmem:[#allocation75_spill] sm:$0xff] %v4987_v40 }
 0x1cd   :  { %v3464_v60 = vpop.f32.mrb[8].mxu0  ;;  %v3544_v29 = vpop.f32.mrb[8].mxu1 }
 0x1ce   :  { %v2320_v48 = vadd.f32 %v3464_v60, %v4131_v43  ;;  %v2640_v41 = vadd.f32 %v3544_v29, %v4803_v28  ;;  %v2311_v32 = vpop.f32.mrb[9].mxu0  ;;  %v2631_v49 = vpop.f32.mrb[9].mxu1 }
 0x1cf   :  { %v2312_v8 = vadd.f32 %v2311_v32, %v4121_v39  ;;  %v2632_v24 = vadd.f32 %v2631_v49, %v4787_v9  ;;  %v3465_v12 = vpop.f32.mrb[10].mxu0  ;;  %v3545_v0 = vpop.f32.mrb[10].mxu1 }
 0x1d0   :  { %2952 = vst [vmem:[#allocation2 + $0x10] sm:$0xff] %v2320_v48  ;;  %3032 = vst [vmem:[#allocation2 + $0x290] sm:$0xff] %v2640_v41  ;;  %v2323_v1 = vadd.f32 %v3465_v12, %v4129_v42  ;;  %v2643_v40 = vadd.f32 %v3545_v0, %v4801_v5  ;;  %v2314_v45 = vpop.f32.mrb[11].mxu0  ;;  %v2634_v43 = vpop.f32.mrb[11].mxu1 }
 0x1d1   :  { %2950 = vst [vmem:[#allocation2] sm:$0xff] %v2312_v8  ;;  %3030 = vst [vmem:[#allocation2 + $0x280] sm:$0xff] %v2632_v24  ;;  %v2315_v28 = vadd.f32 %v2314_v45, %v4119_v38  ;;  %v2635_v60 = vadd.f32 %v2634_v43, %v4785_v36  ;;  %v4997_v39 = vpop.permute.xlu1 %1453  ;;  %v4999_v32 = vpop.permute.xlu0 %1448 }
 0x1d2   :  { %2953 = vst [vmem:[#allocation2 + $0x18] sm:$0xff] %v2323_v1  ;;  %3033 = vst [vmem:[#allocation2 + $0x298] sm:$0xff] %v2643_v40 }
 0x1d3   :  { %2951 = vst [vmem:[#allocation2 + $0x8] sm:$0xff] %v2315_v28  ;;  %3031 = vst [vmem:[#allocation2 + $0x288] sm:$0xff] %v2635_v60 }
 0x1d5   :  { %v3468_v41 = vpop.f32.mrb[12].mxu0  ;;  %v3548_v24 = vpop.f32.mrb[12].mxu1 }
 0x1d6   :  { %v2336_v42 = vadd.f32 %v3468_v41, %v4151_v51  ;;  %v2656_v48 = vadd.f32 %v3548_v24, %v4831_v30  ;;  %v2327_v49 = vpop.f32.mrb[13].mxu0  ;;  %v2647_v0 = vpop.f32.mrb[13].mxu1 }
 0x1d7   :  { %v2328_v38 = vadd.f32 %v2327_v49, %v4141_v47  ;;  %v2648_v12 = vadd.f32 %v2647_v0, %v4823_v17  ;;  %v3469_v1 = vpop.f32.mrb[14].mxu0  ;;  %v3549_v40 = vpop.f32.mrb[14].mxu1 }
 0x1d8   :  { %2956 = vst [vmem:[#allocation2 + $0x30] sm:$0xff] %v2336_v42  ;;  %3036 = vst [vmem:[#allocation2 + $0x2b0] sm:$0xff] %v2656_v48  ;;  %v2339_v36 = vadd.f32 %v3469_v1, %v4149_v50  ;;  %v2659_v9 = vadd.f32 %v3549_v40, %v4829_v4  ;;  %v2330_v5 = vpop.f32.mrb[15].mxu0  ;;  %v2650_v8 = vpop.f32.mrb[15].mxu1 }
 0x1d9   :  { %2954 = vst [vmem:[#allocation2 + $0x20] sm:$0xff] %v2328_v38  ;;  %3034 = vst [vmem:[#allocation2 + $0x2a0] sm:$0xff] %v2648_v12  ;;  %v2331_v51 = vadd.f32 %v2330_v5, %v4139_v46  ;;  %v2651_v30 = vadd.f32 %v2650_v8, %v4821_v26  ;;  %v5009_v47 = vpop.permute.xlu1 %1463  ;;  %v5011_v17 = vpop.permute.xlu0 %1458 }
 0x1da   :  { %2957 = vst [vmem:[#allocation2 + $0x38] sm:$0xff] %v2339_v36  ;;  %3037 = vst [vmem:[#allocation2 + $0x2b8] sm:$0xff] %v2659_v9 }
 0x1db   :  { %2955 = vst [vmem:[#allocation2 + $0x28] sm:$0xff] %v2331_v51  ;;  %3035 = vst [vmem:[#allocation2 + $0x2a8] sm:$0xff] %v2651_v30 }
 0x1dd   :  { %v3472_v45 = vpop.f32.mrb[16].mxu0  ;;  %v3552_v50 = vpop.f32.mrb[16].mxu1 }
 0x1de   :  { %v2352_v4 = vadd.f32 %v3472_v45, %v4171_v59  ;;  %v2672_v29 = vadd.f32 %v3552_v50, %v4867_v56  ;;  %v2343_v43 = vpop.f32.mrb[17].mxu0  ;;  %v2663_v28 = vpop.f32.mrb[17].mxu1 }
 0x1df   :  { %v2344_v46 = vadd.f32 %v2343_v43, %v4161_v55  ;;  %v2664_v26 = vadd.f32 %v2663_v28, %v4851_v23  ;;  %v3473_v60 = vpop.f32.mrb[18].mxu0  ;;  %v3553_v41 = vpop.f32.mrb[18].mxu1 }
 0x1e0   :  { %2960 = vst [vmem:[#allocation2 + $0x50] sm:$0xff] %v2352_v4  ;;  %3040 = vst [vmem:[#allocation2 + $0x2d0] sm:$0xff] %v2672_v29  ;;  %v2355_v24 = vadd.f32 %v3473_v60, %v4169_v58  ;;  %v2675_v42 = vadd.f32 %v3553_v41, %v4865_v22  ;;  %v2346_v48 = vpop.f32.mrb[19].mxu0  ;;  %v2666_v49 = vpop.f32.mrb[19].mxu1 }
 0x1e1   :  { %2958 = vst [vmem:[#allocation2 + $0x40] sm:$0xff] %v2344_v46  ;;  %3038 = vst [vmem:[#allocation2 + $0x2c0] sm:$0xff] %v2664_v26  ;;  %v2347_v59 = vadd.f32 %v2346_v48, %v4159_v54  ;;  %v2667_v56 = vadd.f32 %v2666_v49, %v4849_v35  ;;  %v5021_v55 = vpop.permute.xlu1 %1473  ;;  %v5023_v23 = vpop.permute.xlu0 %1468 }
 0x1e2   :  { %2961 = vst [vmem:[#allocation2 + $0x58] sm:$0xff] %v2355_v24  ;;  %3041 = vst [vmem:[#allocation2 + $0x2d8] sm:$0xff] %v2675_v42 }
 0x1e3   :  { %2959 = vst [vmem:[#allocation2 + $0x48] sm:$0xff] %v2347_v59  ;;  %3039 = vst [vmem:[#allocation2 + $0x2c8] sm:$0xff] %v2667_v56 }
 0x1e5   :  { %v3476_v0 = vpop.f32.mrb[20].mxu0  ;;  %v3556_v58 = vpop.f32.mrb[20].mxu1 }
 0x1e6   :  { %v2368_v22 = vadd.f32 %v3476_v0, %v4191_v3  ;;  %v2688_v38 = vadd.f32 %v3556_v58, %v4895_v20  ;;  %v2359_v12 = vpop.f32.mrb[21].mxu0  ;;  %v2679_v1 = vpop.f32.mrb[21].mxu1 }
 0x1e7   :  { %v2360_v54 = vadd.f32 %v2359_v12, %v4181_v63  ;;  %v2680_v35 = vadd.f32 %v2679_v1, %v4887_v21  ;;  %v3477_v40 = vpop.f32.mrb[22].mxu0  ;;  %v3557_v36 = vpop.f32.mrb[22].mxu1 }
 0x1e8   :  { %2964 = vst [vmem:[#allocation2 + $0x70] sm:$0xff] %v2368_v22  ;;  %3044 = vst [vmem:[#allocation2 + $0x2f0] sm:$0xff] %v2688_v38  ;;  %v2371_v9 = vadd.f32 %v3477_v40, %v4189_v2  ;;  %v2691_v5 = vadd.f32 %v3557_v36, %v4893_v53  ;;  %v2362_v8 = vpop.f32.mrb[23].mxu0  ;;  %v2682_v51 = vpop.f32.mrb[23].mxu1 }
 0x1e9   :  { %2962 = vst [vmem:[#allocation2 + $0x60] sm:$0xff] %v2360_v54  ;;  %3042 = vst [vmem:[#allocation2 + $0x2e0] sm:$0xff] %v2680_v35  ;;  %v2363_v3 = vadd.f32 %v2362_v8, %v4179_v62  ;;  %v2683_v20 = vadd.f32 %v2682_v51, %v4885_v16  ;;  %v5033_v63 = vpop.permute.xlu1 %1483  ;;  %v5035_v21 = vpop.permute.xlu0 %1478  ;;  %v5293_v35 = vld [vmem:[#allocation60_spill] sm:$0xff]  ;;  %v5295_v8 = vld [vmem:[#allocation61_spill] sm:$0xff] }
 0x1ea   :  { %2965 = vst [vmem:[#allocation2 + $0x78] sm:$0xff] %v2371_v9  ;;  %3045 = vst [vmem:[#allocation2 + $0x2f8] sm:$0xff] %v2691_v5  ;;  %v5294_v9 = vld [vmem:[#allocation6_spill] sm:$0xff] }
 0x1eb   :  { %2963 = vst [vmem:[#allocation2 + $0x68] sm:$0xff] %v2363_v3  ;;  %3043 = vst [vmem:[#allocation2 + $0x2e8] sm:$0xff] %v2683_v20 }
 0x1ed   :  { %v3480_v30 = vpop.f32.mrb[24].mxu0  ;;  %v3560_v2 = vpop.f32.mrb[24].mxu1 }
 0x1ee   :  { %v2384_v53 = vadd.f32 %v3480_v30, %v4211_v11  ;;  %v2704_v45 = vadd.f32 %v3560_v2, %v4931_v57  ;;  %v2375_v50 = vpop.f32.mrb[25].mxu0  ;;  %v2695_v4 = vpop.f32.mrb[25].mxu1  ;;  %v5297_v30 = vld [vmem:[#allocation59_spill] sm:$0xff] }
 0x1ef   :  { %v2376_v62 = vadd.f32 %v2375_v50, %v4201_v7  ;;  %v2696_v16 = vadd.f32 %v2695_v4, %v4915_v27  ;;  %v3481_v29 = vpop.f32.mrb[26].mxu0  ;;  %v3561_v43 = vpop.f32.mrb[26].mxu1  ;;  %v5298_v4 = vld [vmem:[#allocation10_spill] sm:$0xff] }
 0x1f0   :  { %2968 = vst [vmem:[#allocation2 + $0x90] sm:$0xff] %v2384_v53  ;;  %3048 = vst [vmem:[#allocation2 + $0x310] sm:$0xff] %v2704_v45  ;;  %v2387_v28 = vadd.f32 %v3481_v29, %v4209_v10  ;;  %v2707_v46 = vadd.f32 %v3561_v43, %v4929_v61  ;;  %v2378_v26 = vpop.f32.mrb[27].mxu0  ;;  %v2698_v60 = vpop.f32.mrb[27].mxu1 }
 0x1f1   :  { %2966 = vst [vmem:[#allocation2 + $0x80] sm:$0xff] %v2376_v62  ;;  %3046 = vst [vmem:[#allocation2 + $0x300] sm:$0xff] %v2696_v16  ;;  %v2379_v11 = vadd.f32 %v2378_v26, %v4199_v6  ;;  %v2699_v57 = vadd.f32 %v2698_v60, %v4913_v13  ;;  %v5045_v7 = vpop.permute.xlu1 %1493  ;;  %v5047_v27 = vpop.permute.xlu0 %1488  ;;  %v5299_v16 = vld [vmem:[#allocation65_spill] sm:$0xff]  ;;  %v5301_v60 = vld [vmem:[#allocation63_spill] sm:$0xff] }
 0x1f2   :  { %2969 = vst [vmem:[#allocation2 + $0x98] sm:$0xff] %v2387_v28  ;;  %3049 = vst [vmem:[#allocation2 + $0x318] sm:$0xff] %v2707_v46  ;;  %v5300_v46 = vld [vmem:[#allocation8_spill] sm:$0xff] }
 0x1f3   :  { %2967 = vst [vmem:[#allocation2 + $0x88] sm:$0xff] %v2379_v11  ;;  %3047 = vst [vmem:[#allocation2 + $0x308] sm:$0xff] %v2699_v57 }
 0x1f5   :  { %v3484_v41 = vpop.f32.mrb[28].mxu0  ;;  %v3564_v10 = vpop.f32.mrb[28].mxu1 }
 0x1f6   :  { %v2400_v61 = vadd.f32 %v3484_v41, %v4231_v19  ;;  %v2720_v24 = vadd.f32 %v3564_v10, %v4951_v52  ;;  %v2391_v42 = vpop.f32.mrb[29].mxu0  ;;  %v2711_v48 = vpop.f32.mrb[29].mxu1  ;;  %v5302_v10 = vld [vmem:[#allocation9_spill] sm:$0xff] }
 0x1f7   :  { %v2392_v6 = vadd.f32 %v2391_v42, %v4221_v15  ;;  %v2712_v13 = vadd.f32 %v2711_v48, %v4945_v31  ;;  %v3485_v49 = vpop.f32.mrb[30].mxu0  ;;  %v3565_v59 = vpop.f32.mrb[30].mxu1 }
 0x1f8   :  { %2972 = vst [vmem:[#allocation2 + $0xb0] sm:$0xff] %v2400_v61  ;;  %3052 = vst [vmem:[#allocation2 + $0x330] sm:$0xff] %v2720_v24  ;;  %v2403_v56 = vadd.f32 %v3485_v49, %v4229_v18  ;;  %v2723_v0 = vadd.f32 %v3565_v59, %v4949_v37  ;;  %v2394_v58 = vpop.f32.mrb[31].mxu0  ;;  %v2714_v22 = vpop.f32.mrb[31].mxu1  ;;  %v5303_v24 = vld [vmem:[#allocation64_spill] sm:$0xff]  ;;  %v5305_v59 = vld [vmem:[#allocation62_spill] sm:$0xff] }
 0x1f9   :  { %2970 = vst [vmem:[#allocation2 + $0xa0] sm:$0xff] %v2392_v6  ;;  %3050 = vst [vmem:[#allocation2 + $0x320] sm:$0xff] %v2712_v13  ;;  %v2395_v19 = vadd.f32 %v2394_v58, %v4219_v14  ;;  %v2715_v52 = vadd.f32 %v2714_v22, %v4943_v34  ;;  %v5057_v15 = vpop.permute.xlu1 %1503  ;;  %v5059_v31 = vpop.permute.xlu0 %1498  ;;  %v5304_v13 = vld [vmem:[#allocation7_spill] sm:$0xff] }
 0x1fa   :  { %2973 = vst [vmem:[#allocation2 + $0xb8] sm:$0xff] %v2403_v56  ;;  %3053 = vst [vmem:[#allocation2 + $0x338] sm:$0xff] %v2723_v0 }
 0x1fb   :  { %2971 = vst [vmem:[#allocation2 + $0xa8] sm:$0xff] %v2395_v19  ;;  %3051 = vst [vmem:[#allocation2 + $0x328] sm:$0xff] %v2715_v52  ;;  %v5306_v52 = vld [vmem:[#allocation14_spill] sm:$0xff] }
 0x1fd   :  { %v3488_v38 = vpop.f32.mrb[32].mxu0  ;;  %v3568_v18 = vpop.f32.mrb[32].mxu1 }
 0x1fe   :  { %v2416_v37 = vadd.f32 %v3488_v38, %v4251_v33  ;;  %v2736_v12 = vadd.f32 %v3568_v18, %v4959_v44  ;;  %v2407_v1 = vpop.f32.mrb[33].mxu0  ;;  %v2727_v54 = vpop.f32.mrb[33].mxu1  ;;  %v5296_v33 = vld [vmem:[#allocation5_spill] sm:$0xff] }
 0x1ff   :  { %v2408_v14 = vadd.f32 %v2407_v1, %v4241_v25  ;;  %v2728_v34 = vadd.f32 %v2727_v54, %v5293_v35  ;;  %v3489_v40 = vpop.f32.mrb[34].mxu0  ;;  %v3569_v36 = vpop.f32.mrb[34].mxu1  ;;  %v5307_v18 = vld [vmem:[#allocation69_spill] sm:$0xff]  ;;  %v5308_v54 = vld [vmem:[#allocation12_spill] sm:$0xff]  ;;  %v5309_v35 = vld [vmem:[#allocation67_spill] sm:$0xff] }
 0x200   :  { %2976 = vst [vmem:[#allocation2 + $0xd0] sm:$0xff] %v2416_v37  ;;  %3056 = vst [vmem:[#allocation2 + $0x350] sm:$0xff] %v2736_v12  ;;  %v2419_v5 = vadd.f32 %v3489_v40, %v5294_v9  ;;  %v2739_v51 = vadd.f32 %v3569_v36, %v5295_v8  ;;  %v2410_v3 = vpop.f32.mrb[35].mxu0  ;;  %v2730_v20 = vpop.f32.mrb[35].mxu1  ;;  %v5310_v9 = vld [vmem:[#allocation13_spill] sm:$0xff]  ;;  %v5311_v8 = vld [vmem:[#allocation68_spill] sm:$0xff] }
 0x201   :  { %2974 = vst [vmem:[#allocation2 + $0xc0] sm:$0xff] %v2408_v14  ;;  %3054 = vst [vmem:[#allocation2 + $0x340] sm:$0xff] %v2728_v34  ;;  %v2411_v44 = vadd.f32 %v2410_v3, %v5296_v33  ;;  %v2731_v2 = vadd.f32 %v2730_v20, %v5297_v30  ;;  %v5069_v25 = vpop.permute.xlu1 %1513  ;;  %v5071_v53 = vpop.permute.xlu0 %1508  ;;  %v5312_v33 = vld [vmem:[#allocation11_spill] sm:$0xff]  ;;  %v5313_v30 = vld [vmem:[#allocation66_spill] sm:$0xff] }
 0x202   :  { %2977 = vst [vmem:[#allocation2 + $0xd8] sm:$0xff] %v2419_v5  ;;  %3057 = vst [vmem:[#allocation2 + $0x358] sm:$0xff] %v2739_v51 }
 0x203   :  { %2975 = vst [vmem:[#allocation2 + $0xc8] sm:$0xff] %v2411_v44  ;;  %3055 = vst [vmem:[#allocation2 + $0x348] sm:$0xff] %v2731_v2 }
 0x205   :  { %v3492_v45 = vpop.f32.mrb[36].mxu0  ;;  %v3572_v50 = vpop.f32.mrb[36].mxu1 }
 0x206   :  { %v2432_v62 = vadd.f32 %v3492_v45, %v5298_v4  ;;  %v2752_v29 = vadd.f32 %v3572_v50, %v5299_v16  ;;  %v2423_v43 = vpop.f32.mrb[37].mxu0  ;;  %v2743_v28 = vpop.f32.mrb[37].mxu1  ;;  %v5314_v16 = vld [vmem:[#allocation18_spill] sm:$0xff] }
 0x207   :  { %v2424_v26 = vadd.f32 %v2423_v43, %v5300_v46  ;;  %v2744_v11 = vadd.f32 %v2743_v28, %v5301_v60  ;;  %v3493_v57 = vpop.f32.mrb[38].mxu0  ;;  %v3573_v41 = vpop.f32.mrb[38].mxu1  ;;  %v5315_v43 = vld [vmem:[#allocation73_spill] sm:$0xff]  ;;  %v5316_v60 = vld [vmem:[#allocation16_spill] sm:$0xff] }
 0x208   :  { %2980 = vst [vmem:[#allocation2 + $0xf0] sm:$0xff] %v2432_v62  ;;  %3060 = vst [vmem:[#allocation2 + $0x370] sm:$0xff] %v2752_v29  ;;  %v2435_v61 = vadd.f32 %v3493_v57, %v5302_v10  ;;  %v2755_v42 = vadd.f32 %v3573_v41, %v5303_v24  ;;  %v2426_v48 = vpop.f32.mrb[39].mxu0  ;;  %v2746_v6 = vpop.f32.mrb[39].mxu1  ;;  %v5317_v57 = vld [vmem:[#allocation71_spill] sm:$0xff]  ;;  %v5318_v24 = vld [vmem:[#allocation17_spill] sm:$0xff] }
 0x209   :  { %2978 = vst [vmem:[#allocation2 + $0xe0] sm:$0xff] %v2424_v26  ;;  %3058 = vst [vmem:[#allocation2 + $0x360] sm:$0xff] %v2744_v11  ;;  %v2427_v49 = vadd.f32 %v2426_v48, %v5304_v13  ;;  %v2747_v56 = vadd.f32 %v2746_v6, %v5305_v59  ;;  %v5081_v0 = vpop.permute.xlu1 %1523  ;;  %v5083_v58 = vpop.permute.xlu0 %1518  ;;  %v5319_v48 = vld [vmem:[#allocation72_spill] sm:$0xff]  ;;  %v5320_v59 = vld [vmem:[#allocation15_spill] sm:$0xff] }
 0x20a   :  { %2981 = vst [vmem:[#allocation2 + $0xf8] sm:$0xff] %v2435_v61  ;;  %3061 = vst [vmem:[#allocation2 + $0x378] sm:$0xff] %v2755_v42 }
 0x20b   :  { %2979 = vst [vmem:[#allocation2 + $0xe8] sm:$0xff] %v2427_v49  ;;  %3059 = vst [vmem:[#allocation2 + $0x368] sm:$0xff] %v2747_v56 }
 0x20d   :  { %v3496_v22 = vpop.f32.mrb[40].mxu0  ;;  %v3576_v19 = vpop.f32.mrb[40].mxu1 }
 0x20e   :  { %v2448_v38 = vadd.f32 %v3496_v22, %v5306_v52  ;;  %v2768_v37 = vadd.f32 %v3576_v19, %v5307_v18  ;;  %v2439_v12 = vpop.f32.mrb[41].mxu0  ;;  %v2759_v1 = vpop.f32.mrb[41].mxu1  ;;  %v5321_v22 = vld [vmem:[#allocation70_spill] sm:$0xff] }
 0x20f   :  { %v2440_v14 = vadd.f32 %v2439_v12, %v5308_v54  ;;  %v2760_v34 = vadd.f32 %v2759_v1, %v5309_v35  ;;  %v3497_v40 = vpop.f32.mrb[42].mxu0  ;;  %v3577_v36 = vpop.f32.mrb[42].mxu1  ;;  %v5322_v12 = vld [vmem:[#allocation22_spill] sm:$0xff] }
 0x210   :  { %2984 = vst [vmem:[#allocation2 + $0x110] sm:$0xff] %v2448_v38  ;;  %3064 = vst [vmem:[#allocation2 + $0x390] sm:$0xff] %v2768_v37  ;;  %v2451_v5 = vadd.f32 %v3497_v40, %v5310_v9  ;;  %v2771_v51 = vadd.f32 %v3577_v36, %v5311_v8  ;;  %v2442_v3 = vpop.f32.mrb[43].mxu0  ;;  %v2762_v20 = vpop.f32.mrb[43].mxu1  ;;  %v5324_v36 = vld [vmem:[#allocation75_spill] sm:$0xff] }
 0x211   :  { %2982 = vst [vmem:[#allocation2 + $0x100] sm:$0xff] %v2440_v14  ;;  %3062 = vst [vmem:[#allocation2 + $0x380] sm:$0xff] %v2760_v34  ;;  %v2443_v44 = vadd.f32 %v2442_v3, %v5312_v33  ;;  %v2763_v2 = vadd.f32 %v2762_v20, %v5313_v30  ;;  %v5093_v45 = vpop.permute.xlu1 %1533  ;;  %v5095_v50 = vpop.permute.xlu0 %1528  ;;  %v5323_v34 = vld [vmem:[#allocation20_spill] sm:$0xff]  ;;  %v5326_v30 = vld [vmem:[#allocation19_spill] sm:$0xff] }
 0x212   :  { %2985 = vst [vmem:[#allocation2 + $0x118] sm:$0xff] %v2451_v5  ;;  %3065 = vst [vmem:[#allocation2 + $0x398] sm:$0xff] %v2771_v51  ;;  %v5325_v51 = vld [vmem:[#allocation21_spill] sm:$0xff] }
 0x213   :  { %2983 = vst [vmem:[#allocation2 + $0x108] sm:$0xff] %v2443_v44  ;;  %3063 = vst [vmem:[#allocation2 + $0x388] sm:$0xff] %v2763_v2  ;;  %v5327_v2 = vld [vmem:[#allocation74_spill] sm:$0xff] }
 0x215   :  { %v3500_v4 = vpop.f32.mrb[44].mxu0  ;;  %v3580_v62 = vpop.f32.mrb[44].mxu1 }
 0x216   :  { %v2464_v29 = vadd.f32 %v3500_v4, %v5314_v16  ;;  %v2784_v28 = vadd.f32 %v3580_v62, %v5315_v43  ;;  %v2455_v46 = vpop.f32.mrb[45].mxu0  ;;  %v2775_v26 = vpop.f32.mrb[45].mxu1 }
 0x217   :  { %v2456_v11 = vadd.f32 %v2455_v46, %v5316_v60  ;;  %v2776_v41 = vadd.f32 %v2775_v26, %v5317_v57  ;;  %v3501_v10 = vpop.f32.mrb[46].mxu0  ;;  %v3581_v61 = vpop.f32.mrb[46].mxu1 }
 0x218   :  { %2988 = vst [vmem:[#allocation2 + $0x130] sm:$0xff] %v2464_v29  ;;  %3068 = vst [vmem:[#allocation2 + $0x3b0] sm:$0xff] %v2784_v28  ;;  %v2467_v42 = vadd.f32 %v3501_v10, %v5318_v24  ;;  %v2787_v6 = vadd.f32 %v3581_v61, %v5319_v48  ;;  %v2458_v13 = vpop.f32.mrb[47].mxu0  ;;  %v2778_v49 = vpop.f32.mrb[47].mxu1  ;;  %v5328_v28 = vld [vmem:[#allocation26_spill] sm:$0xff]  ;;  %v5330_v24 = vld [vmem:[#allocation25_spill] sm:$0xff] }
 0x219   :  { %2986 = vst [vmem:[#allocation2 + $0x120] sm:$0xff] %v2456_v11  ;;  %3066 = vst [vmem:[#allocation2 + $0x3a0] sm:$0xff] %v2776_v41  ;;  %v2459_v56 = vadd.f32 %v2458_v13, %v5320_v59  ;;  %v2779_v19 = vadd.f32 %v2778_v49, %v5321_v22  ;;  %v5105_v52 = vpop.permute.xlu1 %1543  ;;  %v5107_v38 = vpop.permute.xlu0 %1538  ;;  %v5329_v11 = vld [vmem:[#allocation24_spill] sm:$0xff]  ;;  %v5331_v49 = vld [vmem:[#allocation23_spill] sm:$0xff] }
 0x21a   :  { %2989 = vst [vmem:[#allocation2 + $0x138] sm:$0xff] %v2467_v42  ;;  %3069 = vst [vmem:[#allocation2 + $0x3b8] sm:$0xff] %v2787_v6 }
 0x21b   :  { %2987 = vst [vmem:[#allocation2 + $0x128] sm:$0xff] %v2459_v56  ;;  %3067 = vst [vmem:[#allocation2 + $0x3a8] sm:$0xff] %v2779_v19 }
 0x21d   :  { %v3504_v18 = vpop.f32.mrb[48].mxu0  ;;  %v3584_v37 = vpop.f32.mrb[48].mxu1 }
 0x21e   :  { %v2480_v1 = vadd.f32 %v3504_v18, %v5322_v12  ;;  %v2800_v54 = vadd.f32 %v3584_v37, %v4999_v32  ;;  %v2471_v14 = vpop.f32.mrb[49].mxu0  ;;  %v2791_v35 = vpop.f32.mrb[49].mxu1  ;;  %v5332_v18 = vld [vmem:[#allocation30_spill] sm:$0xff] }
 0x21f   :  { %v2472_v40 = vadd.f32 %v2471_v14, %v5323_v34  ;;  %v2792_v9 = vadd.f32 %v2791_v35, %v5324_v36  ;;  %v3505_v5 = vpop.f32.mrb[50].mxu0  ;;  %v3585_v8 = vpop.f32.mrb[50].mxu1 }
 0x220   :  { %2992 = vst [vmem:[#allocation2 + $0x150] sm:$0xff] %v2480_v1  ;;  %3072 = vst [vmem:[#allocation2 + $0x3d0] sm:$0xff] %v2800_v54  ;;  %v2483_v3 = vadd.f32 %v3505_v5, %v5325_v51  ;;  %v2803_v20 = vadd.f32 %v3585_v8, %v4997_v39  ;;  %v2474_v33 = vpop.f32.mrb[51].mxu0  ;;  %v2794_v44 = vpop.f32.mrb[51].mxu1  ;;  %v5333_v54 = vld [vmem:[#allocation28_spill] sm:$0xff]  ;;  %v5335_v51 = vld [vmem:[#allocation27_spill] sm:$0xff] }
 0x221   :  { %2990 = vst [vmem:[#allocation2 + $0x140] sm:$0xff] %v2472_v40  ;;  %3070 = vst [vmem:[#allocation2 + $0x3c0] sm:$0xff] %v2792_v9  ;;  %v2475_v32 = vadd.f32 %v2474_v33, %v5326_v30  ;;  %v2795_v4 = vadd.f32 %v2794_v44, %v5327_v2  ;;  %v5117_v62 = vpop.permute.xlu1 %1553  ;;  %v5119_v16 = vpop.permute.xlu0 %1548  ;;  %v5334_v40 = vld [vmem:[#allocation29_spill] sm:$0xff]  ;;  %v5336_v30 = vld [vmem:[#allocation34_spill] sm:$0xff] }
 0x222   :  { %2993 = vst [vmem:[#allocation2 + $0x158] sm:$0xff] %v2483_v3  ;;  %3073 = vst [vmem:[#allocation2 + $0x3d8] sm:$0xff] %v2803_v20 }
 0x223   :  { %2991 = vst [vmem:[#allocation2 + $0x148] sm:$0xff] %v2475_v32  ;;  %3071 = vst [vmem:[#allocation2 + $0x3c8] sm:$0xff] %v2795_v4 }
 0x225   :  { %v3508_v29 = vpop.f32.mrb[52].mxu0  ;;  %v3588_v43 = vpop.f32.mrb[52].mxu1 }
 0x226   :  { %v2496_v39 = vadd.f32 %v3508_v29, %v5328_v28  ;;  %v2816_v46 = vadd.f32 %v3588_v43, %v5023_v23  ;;  %v2487_v26 = vpop.f32.mrb[53].mxu0  ;;  %v2807_v60 = vpop.f32.mrb[53].mxu1  ;;  %v5337_v29 = vld [vmem:[#allocation32_spill] sm:$0xff] }
 0x227   :  { %v2488_v57 = vadd.f32 %v2487_v26, %v5329_v11  ;;  %v2808_v41 = vadd.f32 %v2807_v60, %v5011_v17  ;;  %v3509_v10 = vpop.f32.mrb[54].mxu0  ;;  %v3589_v61 = vpop.f32.mrb[54].mxu1 }
 0x228   :  { %2996 = vst [vmem:[#allocation2 + $0x170] sm:$0xff] %v2496_v39  ;;  %3076 = vst [vmem:[#allocation2 + $0x3f0] sm:$0xff] %v2816_v46  ;;  %v2499_v42 = vadd.f32 %v3509_v10, %v5330_v24  ;;  %v2819_v48 = vadd.f32 %v3589_v61, %v5021_v55  ;;  %v2490_v6 = vpop.f32.mrb[55].mxu0  ;;  %v2810_v13 = vpop.f32.mrb[55].mxu1  ;;  %v5338_v46 = vld [vmem:[#allocation33_spill] sm:$0xff] }
 0x229   :  { %2994 = vst [vmem:[#allocation2 + $0x160] sm:$0xff] %v2488_v57  ;;  %3074 = vst [vmem:[#allocation2 + $0x3e0] sm:$0xff] %v2808_v41  ;;  %v2491_v23 = vadd.f32 %v2490_v6, %v5331_v49  ;;  %v2811_v59 = vadd.f32 %v2810_v13, %v5009_v47  ;;  %v5129_v17 = vpop.permute.xlu1 %1563  ;;  %v5131_v56 = vpop.permute.xlu0 %1558  ;;  %v5339_v41 = vld [vmem:[#allocation31_spill] sm:$0xff] }
 0x22a   :  { %2997 = vst [vmem:[#allocation2 + $0x178] sm:$0xff] %v2499_v42  ;;  %3077 = vst [vmem:[#allocation2 + $0x3f8] sm:$0xff] %v2819_v48  ;;  %v5340_v48 = vld [vmem:[#allocation38_spill] sm:$0xff] }
 0x22b   :  { %2995 = vst [vmem:[#allocation2 + $0x168] sm:$0xff] %v2491_v23  ;;  %3075 = vst [vmem:[#allocation2 + $0x3e8] sm:$0xff] %v2811_v59  ;;  %v5341_v23 = vld [vmem:[#allocation36_spill] sm:$0xff] }
 0x22d   :  { %v3512_v22 = vpop.f32.mrb[56].mxu0  ;;  %v3592_v19 = vpop.f32.mrb[56].mxu1 }
 0x22e   :  { %v2512_v55 = vadd.f32 %v3512_v22, %v5332_v18  ;;  %v2832_v37 = vadd.f32 %v3592_v19, %v5047_v27  ;;  %v2503_v12 = vpop.f32.mrb[57].mxu0  ;;  %v2823_v1 = vpop.f32.mrb[57].mxu1  ;;  %v5342_v18 = vld [vmem:[#allocation37_spill] sm:$0xff] }
 0x22f   :  { %v2504_v14 = vadd.f32 %v2503_v12, %v5333_v54  ;;  %v2824_v47 = vadd.f32 %v2823_v1, %v5035_v21  ;;  %v3513_v35 = vpop.f32.mrb[58].mxu0  ;;  %v3593_v34 = vpop.f32.mrb[58].mxu1  ;;  %v5343_v54 = vld [vmem:[#allocation35_spill] sm:$0xff] }
 0x230   :  { %3000 = vst [vmem:[#allocation2 + $0x190] sm:$0xff] %v2512_v55  ;;  %3080 = vst [vmem:[#allocation2 + $0x410] sm:$0xff] %v2832_v37  ;;  %v2515_v36 = vadd.f32 %v3513_v35, %v5334_v40  ;;  %v2835_v9 = vadd.f32 %v3593_v34, %v5045_v7  ;;  %v2506_v5 = vpop.f32.mrb[59].mxu0  ;;  %v2826_v8 = vpop.f32.mrb[59].mxu1  ;;  %v5344_v40 = vld [vmem:[#allocation42_spill] sm:$0xff] }
 0x231   :  { %2998 = vst [vmem:[#allocation2 + $0x180] sm:$0xff] %v2504_v14  ;;  %3078 = vst [vmem:[#allocation2 + $0x400] sm:$0xff] %v2824_v47  ;;  %v2507_v27 = vadd.f32 %v2506_v5, %v5335_v51  ;;  %v2827_v3 = vadd.f32 %v2826_v8, %v5033_v63  ;;  %v5141_v21 = vpop.permute.xlu1 %1573  ;;  %v5143_v20 = vpop.permute.xlu0 %1568  ;;  %v5345_v8 = vld [vmem:[#allocation40_spill] sm:$0xff] }
 0x232   :  { %3001 = vst [vmem:[#allocation2 + $0x198] sm:$0xff] %v2515_v36  ;;  %3081 = vst [vmem:[#allocation2 + $0x418] sm:$0xff] %v2835_v9 }
 0x233   :  { %2999 = vst [vmem:[#allocation2 + $0x188] sm:$0xff] %v2507_v27  ;;  %3079 = vst [vmem:[#allocation2 + $0x408] sm:$0xff] %v2827_v3 }
 0x235   :  { %v3516_v33 = vpop.f32.mrb[60].mxu0  ;;  %v3596_v44 = vpop.f32.mrb[60].mxu1 }
 0x236   :  { %v2528_v7 = vadd.f32 %v3516_v33, %v5336_v30  ;;  %v2848_v32 = vadd.f32 %v3596_v44, %v5071_v53  ;;  %v2519_v2 = vpop.f32.mrb[61].mxu0  ;;  %v2839_v4 = vpop.f32.mrb[61].mxu1  ;;  %v5346_v33 = vld [vmem:[#allocation41_spill] sm:$0xff] }
 0x237   :  { %v2520_v43 = vadd.f32 %v2519_v2, %v5337_v29  ;;  %v2840_v63 = vadd.f32 %v2839_v4, %v5059_v31  ;;  %v3517_v28 = vpop.f32.mrb[62].mxu0  ;;  %v3597_v39 = vpop.f32.mrb[62].mxu1  ;;  %v5347_v2 = vld [vmem:[#allocation39_spill] sm:$0xff] }
 0x238   :  { %3004 = vst [vmem:[#allocation2 + $0x1b0] sm:$0xff] %v2528_v7  ;;  %3084 = vst [vmem:[#allocation2 + $0x430] sm:$0xff] %v2848_v32  ;;  %v2531_v26 = vadd.f32 %v3517_v28, %v5338_v46  ;;  %v2851_v60 = vadd.f32 %v3597_v39, %v5069_v25  ;;  %v2522_v11 = vpop.f32.mrb[63].mxu0  ;;  %v2842_v57 = vpop.f32.mrb[63].mxu1  ;;  %v5348_v28 = vld [vmem:[#allocation46_spill] sm:$0xff] }
 0x239   :  { %3002 = vst [vmem:[#allocation2 + $0x1a0] sm:$0xff] %v2520_v43  ;;  %3082 = vst [vmem:[#allocation2 + $0x420] sm:$0xff] %v2840_v63  ;;  %v2523_v53 = vadd.f32 %v2522_v11, %v5339_v41  ;;  %v2843_v10 = vadd.f32 %v2842_v57, %v5057_v15  ;;  %v5153_v31 = vpop.permute.xlu1 %1583  ;;  %v5155_v61 = vpop.permute.xlu0 %1578 }
 0x23a   :  { %3005 = vst [vmem:[#allocation2 + $0x1b8] sm:$0xff] %v2531_v26  ;;  %3085 = vst [vmem:[#allocation2 + $0x438] sm:$0xff] %v2851_v60  ;;  %v5349_v60 = vld [vmem:[#allocation44_spill] sm:$0xff] }
 0x23b   :  { %3003 = vst [vmem:[#allocation2 + $0x1a8] sm:$0xff] %v2523_v53  ;;  %3083 = vst [vmem:[#allocation2 + $0x428] sm:$0xff] %v2843_v10  ;;  %v5350_v53 = vld [vmem:[#allocation45_spill] sm:$0xff] }
 0x23d   :  { %v3520_v24 = vpop.f32.mrb[64].mxu0  ;;  %v3600_v42 = vpop.f32.mrb[64].mxu1 }
 0x23e   :  { %v2544_v25 = vadd.f32 %v3520_v24, %v5340_v48  ;;  %v2864_v6 = vadd.f32 %v3600_v42, %v5095_v50  ;;  %v2535_v13 = vpop.f32.mrb[65].mxu0  ;;  %v2855_v49 = vpop.f32.mrb[65].mxu1 }
 0x23f   :  { %v2536_v59 = vadd.f32 %v2535_v13, %v5341_v23  ;;  %v2856_v15 = vadd.f32 %v2855_v49, %v5083_v58  ;;  %v3521_v22 = vpop.f32.mrb[66].mxu0  ;;  %v3601_v19 = vpop.f32.mrb[66].mxu1 }
 0x240   :  { %3008 = vst [vmem:[#allocation2 + $0x1d0] sm:$0xff] %v2544_v25  ;;  %3088 = vst [vmem:[#allocation2 + $0x450] sm:$0xff] %v2864_v6  ;;  %v2547_v55 = vadd.f32 %v3521_v22, %v5342_v18  ;;  %v2867_v37 = vadd.f32 %v3601_v19, %v5093_v45  ;;  %v2538_v12 = vpop.f32.mrb[67].mxu0  ;;  %v2858_v1 = vpop.f32.mrb[67].mxu1  ;;  %v5351_v25 = vld [vmem:[#allocation43_spill] sm:$0xff]  ;;  %v5353_v18 = vld [vmem:[#allocation48_spill] sm:$0xff] }
 0x241   :  { %3006 = vst [vmem:[#allocation2 + $0x1c0] sm:$0xff] %v2536_v59  ;;  %3086 = vst [vmem:[#allocation2 + $0x440] sm:$0xff] %v2856_v15  ;;  %v2539_v50 = vadd.f32 %v2538_v12, %v5343_v54  ;;  %v2859_v14 = vadd.f32 %v2858_v1, %v5081_v0  ;;  %v5165_v58 = vpop.permute.xlu1 %1593  ;;  %v1589_v47 = vpop.permute.xlu0 %1588  ;;  %v5352_v59 = vld [vmem:[#allocation50_spill] sm:$0xff] }
 0x242   :  { %3009 = vst [vmem:[#allocation2 + $0x1d8] sm:$0xff] %v2547_v55  ;;  %3089 = vst [vmem:[#allocation2 + $0x458] sm:$0xff] %v2867_v37 }
 0x243   :  { %3007 = vst [vmem:[#allocation2 + $0x1c8] sm:$0xff] %v2539_v50  ;;  %3087 = vst [vmem:[#allocation2 + $0x448] sm:$0xff] %v2859_v14 }
 0x245   :  { %v3524_v35 = vpop.f32.mrb[68].mxu0  ;;  %v3604_v34 = vpop.f32.mrb[68].mxu1 }
 0x246   :  { %v2560_v36 = vadd.f32 %v3524_v35, %v5344_v40  ;;  %v2880_v45 = vadd.f32 %v3604_v34, %v5119_v16  ;;  %v2551_v9 = vpop.f32.mrb[69].mxu0  ;;  %v2871_v5 = vpop.f32.mrb[69].mxu1  ;;  %v5355_v34 = vld [vmem:[#allocation47_spill] sm:$0xff] }
 0x247   :  { %v2552_v51 = vadd.f32 %v2551_v9, %v5345_v8  ;;  %v2872_v27 = vadd.f32 %v2871_v5, %v5107_v38  ;;  %v3525_v0 = vpop.f32.mrb[70].mxu0  ;;  %v3605_v3 = vpop.f32.mrb[70].mxu1  ;;  %v5356_v5 = vld [vmem:[#allocation54_spill] sm:$0xff] }
 0x248   :  { %3012 = vst [vmem:[#allocation2 + $0x1f0] sm:$0xff] %v2560_v36  ;;  %3092 = vst [vmem:[#allocation2 + $0x470] sm:$0xff] %v2880_v45  ;;  %v2563_v44 = vadd.f32 %v3525_v0, %v5346_v33  ;;  %v2883_v30 = vadd.f32 %v3605_v3, %v5117_v62  ;;  %v2554_v7 = vpop.f32.mrb[71].mxu0  ;;  %v2874_v32 = vpop.f32.mrb[71].mxu1  ;;  %v5357_v0 = vld [vmem:[#allocation52_spill] sm:$0xff] }
 0x249   :  { %3010 = vst [vmem:[#allocation2 + $0x1e0] sm:$0xff] %v2552_v51  ;;  %3090 = vst [vmem:[#allocation2 + $0x460] sm:$0xff] %v2872_v27  ;;  %v2555_v16 = vadd.f32 %v2554_v7, %v5347_v2  ;;  %v2875_v4 = vadd.f32 %v2874_v32, %v5105_v52  ;;  %v5175_v38 = vpop.permute.xlu1 %1603  ;;  %v1599_v29 = vpop.permute.xlu0 %1598 }
 0x24a   :  { %3013 = vst [vmem:[#allocation2 + $0x1f8] sm:$0xff] %v2563_v44  ;;  %3093 = vst [vmem:[#allocation2 + $0x478] sm:$0xff] %v2883_v30 }
 0x24b   :  { %3011 = vst [vmem:[#allocation2 + $0x1e8] sm:$0xff] %v2555_v16  ;;  %3091 = vst [vmem:[#allocation2 + $0x468] sm:$0xff] %v2875_v4  ;;  %v5359_v4 = vld [vmem:[#allocation51_spill] sm:$0xff] }
 0x24d   :  { %v3528_v43 = vpop.f32.mrb[72].mxu0  ;;  %v3608_v63 = vpop.f32.mrb[72].mxu1 }
 0x24e   :  { %v2576_v39 = vadd.f32 %v3528_v43, %v5348_v28  ;;  %v2896_v62 = vadd.f32 %v3608_v63, %v5143_v20  ;;  %v2567_v46 = vpop.f32.mrb[73].mxu0  ;;  %v2887_v26 = vpop.f32.mrb[73].mxu1 }
 0x24f   :  { %v2568_v11 = vadd.f32 %v2567_v46, %v5349_v60  ;;  %v2888_v57 = vadd.f32 %v2887_v26, %v5131_v56  ;;  %v3529_v52 = vpop.f32.mrb[74].mxu0  ;;  %v3609_v41 = vpop.f32.mrb[74].mxu1  ;;  %v5360_v46 = vld [vmem:[#allocation58_spill] sm:$0xff] }
 0x250   :  { %3016 = vst [vmem:[#allocation2 + $0x210] sm:$0xff] %v2576_v39  ;;  %3096 = vst [vmem:[#allocation2 + $0x490] sm:$0xff] %v2896_v62  ;;  %v2579_v10 = vadd.f32 %v3529_v52, %v5350_v53  ;;  %v2899_v24 = vadd.f32 %v3609_v41, %v5141_v21  ;;  %v2570_v42 = vpop.f32.mrb[75].mxu0  ;;  %v2890_v48 = vpop.f32.mrb[75].mxu1  ;;  %v5361_v52 = vld [vmem:[#allocation56_spill] sm:$0xff] }
 0x251   :  { %3014 = vst [vmem:[#allocation2 + $0x200] sm:$0xff] %v2568_v11  ;;  %3094 = vst [vmem:[#allocation2 + $0x480] sm:$0xff] %v2888_v57  ;;  %v2571_v20 = vadd.f32 %v2570_v42, %v5351_v25  ;;  %v2891_v6 = vadd.f32 %v2890_v48, %v5129_v17  ;;  %v1614_v56 = vpop.permute.xlu1 %1613  ;;  %v1609_v13 = vpop.permute.xlu0 %1608  ;;  %v5354_v17 = vld [vmem:[#allocation49_spill] sm:$0xff] }
 0x252   :  { %3017 = vst [vmem:[#allocation2 + $0x218] sm:$0xff] %v2579_v10  ;;  %3097 = vst [vmem:[#allocation2 + $0x498] sm:$0xff] %v2899_v24  ;;  %v5362_v24 = vld [vmem:[#allocation57_spill] sm:$0xff] }
 0x253   :  { %3015 = vst [vmem:[#allocation2 + $0x208] sm:$0xff] %v2571_v20  ;;  %3095 = vst [vmem:[#allocation2 + $0x488] sm:$0xff] %v2891_v6  ;;  %v5363_v6 = vld [vmem:[#allocation55_spill] sm:$0xff] }
 0x255   :  { %v3532_v49 = vpop.f32.mrb[76].mxu0  ;;  %v3612_v23 = vpop.f32.mrb[76].mxu1 }
 0x256   :  { %v2592_v15 = vadd.f32 %v3532_v49, %v5352_v59  ;;  %v2912_v22 = vadd.f32 %v3612_v23, %v1589_v47  ;;  %v2583_v21 = vpop.f32.mrb[77].mxu0  ;;  %v2903_v19 = vpop.f32.mrb[77].mxu1 }
 0x257   :  { %v2584_v55 = vadd.f32 %v2583_v21, %v5353_v18  ;;  %v2904_v37 = vadd.f32 %v2903_v19, %v5155_v61  ;;  %v3533_v12 = vpop.f32.mrb[78].mxu0  ;;  %v3613_v1 = vpop.f32.mrb[78].mxu1 }
 0x258   :  { %3020 = vst [vmem:[#allocation2 + $0x230] sm:$0xff] %v2592_v15  ;;  %3100 = vst [vmem:[#allocation2 + $0x4b0] sm:$0xff] %v2912_v22  ;;  %v2595_v54 = vadd.f32 %v3533_v12, %v5354_v17  ;;  %v2915_v50 = vadd.f32 %v3613_v1, %v5165_v58  ;;  %v2586_v14 = vpop.f32.mrb[79].mxu0  ;;  %v2906_v35 = vpop.f32.mrb[79].mxu1 }
 0x259   :  { %3018 = vst [vmem:[#allocation2 + $0x220] sm:$0xff] %v2584_v55  ;;  %3098 = vst [vmem:[#allocation2 + $0x4a0] sm:$0xff] %v2904_v37  ;;  %v2587_v47 = vadd.f32 %v2586_v14, %v5355_v34  ;;  %v2907_v40 = vadd.f32 %v2906_v35, %v5153_v31  ;;  %v1624_v61 = vpop.permute.xlu1 %1623  ;;  %v1619_v36 = vpop.permute.xlu0 %1618  ;;  %v5358_v31 = vld [vmem:[#allocation53_spill] sm:$0xff] }
 0x25a   :  { %3021 = vst [vmem:[#allocation2 + $0x238] sm:$0xff] %v2595_v54  ;;  %3101 = vst [vmem:[#allocation2 + $0x4b8] sm:$0xff] %v2915_v50 }
 0x25b   :  { %3019 = vst [vmem:[#allocation2 + $0x228] sm:$0xff] %v2587_v47  ;;  %3099 = vst [vmem:[#allocation2 + $0x4a8] sm:$0xff] %v2907_v40 }
 0x25d   :  { %v3536_v45 = vpop.f32.mrb[80].mxu0  ;;  %v3616_v9 = vpop.f32.mrb[80].mxu1 }
 0x25e   :  { %v2608_v8 = vadd.f32 %v3536_v45, %v5356_v5  ;;  %v2928_v51 = vadd.f32 %v3616_v9, %v1609_v13  ;;  %v2599_v58 = vpop.f32.mrb[81].mxu0  ;;  %v2919_v27 = vpop.f32.mrb[81].mxu1 }
 0x25f   :  { %v2600_v3 = vadd.f32 %v2599_v58, %v5357_v0  ;;  %v2920_v33 = vadd.f32 %v2919_v27, %v1599_v29  ;;  %v3537_v44 = vpop.f32.mrb[82].mxu0  ;;  %v3617_v30 = vpop.f32.mrb[82].mxu1 }
 0x260   :  { %3024 = vst [vmem:[#allocation2 + $0x250] sm:$0xff] %v2608_v8  ;;  %3104 = vst [vmem:[#allocation2 + $0x4d0] sm:$0xff] %v2928_v51  ;;  %v2611_v7 = vadd.f32 %v3537_v44, %v5358_v31  ;;  %v2931_v32 = vadd.f32 %v3617_v30, %v1614_v56  ;;  %v2602_v2 = vpop.f32.mrb[83].mxu0  ;;  %v2922_v16 = vpop.f32.mrb[83].mxu1 }
 0x261   :  { %3022 = vst [vmem:[#allocation2 + $0x240] sm:$0xff] %v2600_v3  ;;  %3102 = vst [vmem:[#allocation2 + $0x4c0] sm:$0xff] %v2920_v33  ;;  %v2603_v43 = vadd.f32 %v2602_v2, %v5359_v4  ;;  %v2923_v63 = vadd.f32 %v2922_v16, %v5175_v38  ;;  %v1634_v29 = vpop.permute.xlu1 %1633  ;;  %v1629_v28 = vpop.permute.xlu0 %1628 }
 0x262   :  { %3025 = vst [vmem:[#allocation2 + $0x258] sm:$0xff] %v2611_v7  ;;  %3105 = vst [vmem:[#allocation2 + $0x4d8] sm:$0xff] %v2931_v32 }
 0x263   :  { %3023 = vst [vmem:[#allocation2 + $0x248] sm:$0xff] %v2603_v43  ;;  %3103 = vst [vmem:[#allocation2 + $0x4c8] sm:$0xff] %v2923_v63 }
 0x265   :  { %v3540_v39 = vpop.f32.mrb[84].mxu0  ;;  %v3620_v62 = vpop.f32.mrb[84].mxu1 }
 0x266   :  { %v2624_v26 = vadd.f32 %v3540_v39, %v5360_v46  ;;  %v2944_v60 = vadd.f32 %v3620_v62, %v1629_v28  ;;  %v2615_v11 = vpop.f32.mrb[85].mxu0  ;;  %v2935_v57 = vpop.f32.mrb[85].mxu1 }
 0x267   :  { %v2616_v41 = vadd.f32 %v2615_v11, %v5361_v52  ;;  %v2936_v53 = vadd.f32 %v2935_v57, %v1619_v36  ;;  %v3541_v10 = vpop.f32.mrb[86].mxu0  ;;  %v3621_v38 = vpop.f32.mrb[86].mxu1 }
 0x268   :  { %3028 = vst [vmem:[#allocation2 + $0x270] sm:$0xff] %v2624_v26  ;;  %3108 = vst [vmem:[#allocation2 + $0x4f0] sm:$0xff] %v2944_v60  ;;  %v2627_v42 = vadd.f32 %v3541_v10, %v5362_v24  ;;  %v2947_v48 = vadd.f32 %v3621_v38, %v1634_v29  ;;  %v2618_v25 = vpop.f32.mrb[87].mxu0  ;;  %v2938_v20 = vpop.f32.mrb[87].mxu1 }
 0x269   :  { %3026 = vst [vmem:[#allocation2 + $0x260] sm:$0xff] %v2616_v41  ;;  %3106 = vst [vmem:[#allocation2 + $0x4e0] sm:$0xff] %v2936_v53  ;;  %v2619_v56 = vadd.f32 %v2618_v25, %v5363_v6  ;;  %v2939_v13 = vadd.f32 %v2938_v20, %v1624_v61 }
 0x26a   :  { %3029 = vst [vmem:[#allocation2 + $0x278] sm:$0xff] %v2627_v42  ;;  %3109 = vst [vmem:[#allocation2 + $0x4f8] sm:$0xff] %v2947_v48 }
 0x26b   :  { %3027 = vst [vmem:[#allocation2 + $0x268] sm:$0xff] %v2619_v56  ;;  %3107 = vst [vmem:[#allocation2 + $0x4e8] sm:$0xff] %v2939_v13 }
 0x26c   :  { %3748 = shalt.err (!%p3745_p4)
}
 0x26d   :  { %s3749_s14 = scalar_lea.hbm %s5219_s6, 20480 }
 0x26e   :  { %p3750_p5 = scmp.ne.s32.totalorder %s5219_s6, %s3749_s14  ;;  %p3753_p6 = scmp.lt.u32.totalorder %s3749_s14, %s5219_s6 }
 0x270   :  { %p3755_p7 = pnand %p3753_p6, %p3750_p5 }
 0x272   :  { %3758 = shalt.err (!%p3755_p7)
}
 0x273   :  { %s3764_s19 = smov 128   ;;  %s3765_s20 = smov 8  }
 0x274   :  { %3121 = dma.vmem_to_hbm [thread:$0]  %s3116_s11, 20480, %s5219_s6, [#allocation3], %s3764_s19, %s3764_s19, %s3765_s20  }
 0x275   :  { %3759 = dma.done.wait [#allocation3], 20480  }
 0x276   :  { %3760 = vsyncadd [#allocation3], 4294946816 }
 0x277   :  { %3125 = vsyncpa [#allocation3], 1 }

</bundles_post_ra>
